<compile_context>
chip_gen: v5e
topology: v5e:2x2
jax: 0.10.0
libtpu: 0.0.40
codegen_flags: <defaults>
</compile_context>

<pallas_src>
import functools
import math

import jax
import jax.numpy as jnp
from jax import lax
from jax.experimental import pallas as pl
from jax.experimental.pallas import tpu as pltpu


# ---------------------------------------------------------------------------
# Pallas kernel: one LSTM layer, all directions fused, full sequence in-kernel.
# ---------------------------------------------------------------------------
def _lstm_fused_kernel(x_ref, w_in_ref, w_hh_ref, b_ref,
                       out_ref, hN_ref, cN_ref, gx_sc,
                       *, seq_len, batch, ndh):
    """Fused (multi-direction) LSTM layer.

    x_ref   : (S*B, D*F)   bf16  per-direction inputs concatenated on the
                                 feature axis (direction d!=0 pre-time-reversed)
    w_in_ref: (D*F, 4*D*H) bf16  block-diag input->gates projection
    w_hh_ref: (D*H, 4*D*H) bf16  block-diag hidden->gates projection
    b_ref   : (1, 4*D*H)   f32   combined bias (b_ih + b_hh)
    out_ref : (S*B, D*H)   f32   h_t for every step (dir d!=0 in reversed time)
    hN_ref  : (B, D*H)     f32   final hidden per direction
    cN_ref  : (B, D*H)     f32   final cell per direction
    gx_sc   : VMEM (S*B, 4*D*H) f32 scratch: pre-projected input gates

    Gate column layout: [i | f | o | g]; each gate block is D*H wide with the
    per-direction sub-blocks direction-minor, so the h/c carries are simply
    (B, D*H) = [dir0 | dir1] and all elementwise gate math is a single slab.
    """
    S, B, DH = seq_len, batch, ndh
    G3 = 3 * DH

    # (1) Hoist the time-independent input projection out of the recurrence:
    # one big MXU matmul (+bias) over all S*B rows at once.
    gx_sc[...] = (
        jnp.dot(x_ref[...], w_in_ref[...], preferred_element_type=jnp.float32)
        + b_ref[...])

    w_hh = w_hh_ref[...]                                     # resident in VMEM

    def step(t, carry):
        h, c = carry                                         # f32 (B, DH)
        row = t * B
        gates = (jnp.dot(h.astype(w_hh.dtype), w_hh,
                         preferred_element_type=jnp.float32)
                 + gx_sc[pl.ds(row, B), :])                  # (B, 4*DH)
        sig = jax.nn.sigmoid(gates[:, :G3])                  # i|f|o in one slab
        g_g = jnp.tanh(gates[:, G3:])
        i_g = sig[:, :DH]
        f_g = sig[:, DH:2 * DH]
        o_g = sig[:, 2 * DH:G3]
        c_new = f_g * c + i_g * g_g
        h_new = o_g * jnp.tanh(c_new)
        out_ref[pl.ds(row, B), :] = h_new.astype(out_ref.dtype)
        return h_new, c_new

    h0 = jnp.zeros((B, DH), jnp.float32)
    c0 = jnp.zeros((B, DH), jnp.float32)
    h_fin, c_fin = lax.fori_loop(0, S, step, (h0, c0), unroll=(S <= 32))

    hN_ref[...] = h_fin.astype(hN_ref.dtype)
    cN_ref[...] = c_fin.astype(cN_ref.dtype)


def lstm_layer_fused(x, w_in, w_hh, bias, *, hid_dim, num_dir):
    """Run one LSTM layer (all directions fused) over x: (S, B, F).

    Returns (outputs (S, B, D*H), h_N (B, D*H), c_N (B, D*H)) with the
    direction halves of `outputs` already in PyTorch time order.
    """
    S, B, F = x.shape
    D, H = num_dir, hid_dim
    DH = D * H

    if D == 2:
        # Direction 1 consumes the time-reversed sequence.
        x_cat = jnp.concatenate([x, jnp.flip(x, axis=0)], axis=-1)   # (S,B,2F)
    else:
        x_cat = x
    x2 = x_cat.reshape(S * B, D * F).astype(jnp.bfloat16)

    kernel = functools.partial(_lstm_fused_kernel,
                               seq_len=S, batch=B, ndh=DH)
    out2, hN, cN = pl.pallas_call(
        kernel,
        out_shape=(
            jax.ShapeDtypeStruct((S * B, DH), jnp.float32),   # per-step hidden
            jax.ShapeDtypeStruct((B, DH), jnp.float32),       # h_N
            jax.ShapeDtypeStruct((B, DH), jnp.float32),       # c_N
        ),
        scratch_shapes=[
            pltpu.VMEM((S * B, 4 * DH), jnp.float32),         # pre-proj gates
        ],
    )(x2, w_in, w_hh, bias)

    out = out2.reshape(S, B, DH)
    if D == 2:
        # Backward half was produced in reversed time -> flip it back.
        out = jnp.concatenate(
            [out[..., :H], jnp.flip(out[..., H:], axis=0)], axis=-1)
    return out, hN, cN


# ---------------------------------------------------------------------------
# Encoder module (parameters + forward glue around the fused Pallas LSTM).
# ---------------------------------------------------------------------------
class Encoder:
    def __init__(self, input_dim, emb_dim, hid_dim, n_layers, dropout,
                 bidirectional, key):
        self.input_dim = input_dim
        self.emb_dim = emb_dim
        self.hid_dim = hid_dim
        self.n_layers = n_layers
        self.dropout = dropout            # 0.0 -> identity (deterministic)
        self.bidirectional = bidirectional
        self.num_dir = 2 if bidirectional else 1

        D, H = self.num_dir, hid_dim
        DH = D * H
        G = 4 * DH
        bound = 1.0 / math.sqrt(H)

        k_emb, k = jax.random.split(key)
        self.embedding = jax.random.normal(
            k_emb, (input_dim, emb_dim), jnp.float32)

        # Per layer: block-diagonal packed weights, gate order [i, f, o, g],
        # each gate block D*H wide with per-direction sub-blocks.
        self.layers = []   # [(w_in (D*F,G) bf16, w_hh (DH,G) bf16, bias (1,G) f32)]
        for layer in range(n_layers):
            in_feat = emb_dim if layer == 0 else DH
            w_in = jnp.zeros((D * in_feat, G), jnp.float32)
            w_hh = jnp.zeros((DH, G), jnp.float32)
            bias = jnp.zeros((1, G), jnp.float32)
            for d in range(D):
                k, k1, k2, k3, k4 = jax.random.split(k, 5)
                w_ih_d = jax.random.uniform(k1, (4, H, in_feat),
                                            jnp.float32, -bound, bound)
                w_hh_d = jax.random.uniform(k2, (4, H, H),
                                            jnp.float32, -bound, bound)
                b_d = (jax.random.uniform(k3, (4, H), jnp.float32, -bound, bound)
                       + jax.random.uniform(k4, (4, H), jnp.float32, -bound, bound))
                for g in range(4):
                    col = g * DH + d * H
                    w_in = w_in.at[d * in_feat:(d + 1) * in_feat,
                                   col:col + H].set(w_ih_d[g].T)
                    w_hh = w_hh.at[d * H:(d + 1) * H,
                                   col:col + H].set(w_hh_d[g].T)
                    bias = bias.at[0, col:col + H].set(b_d[g])
            self.layers.append((w_in.astype(jnp.bfloat16),
                                w_hh.astype(jnp.bfloat16),
                                bias))

    def __call__(self, src):
        # src: (seq, batch) int32 token ids
        S, B = src.shape
        H, D = self.hid_dim, self.num_dir

        # Embedding lookup + dropout(p); p = 0.0 -> identity (glue, not hot path)
        # TODO(synk): train-mode dropout masks omitted (p=0.0 deterministic path)
        x = jnp.take(self.embedding, src, axis=0)           # (S, B, E)

        h_finals, c_finals = [], []
        for (w_in, w_hh, bias) in self.layers:
            out, hN, cN = lstm_layer_fused(x, w_in, w_hh, bias,
                                           hid_dim=H, num_dir=D)
            for d in range(D):                              # PyTorch layer/dir order
                h_finals.append(hN[:, d * H:(d + 1) * H])
                c_finals.append(cN[:, d * H:(d + 1) * H])
            x = out
            # inter-layer LSTM dropout: p = 0.0 -> identity
            # TODO(synk): on v7x the two directions could additionally be split
            # across the 2 TensorCores via core_map for ~2x per layer.

        outputs = x                                         # (S, B, D*H)
        hidden = jnp.tanh(jnp.stack(h_finals, axis=0))      # (L*D, B, H)
        cell = jnp.stack(c_finals, axis=0)

        if self.bidirectional:
            L = self.n_layers
            hidden = hidden.reshape(L, 2, -1, H)
            hidden = jnp.swapaxes(hidden, 1, 2).reshape(L, -1, 2 * H)
            cell = cell.reshape(L, 2, -1, H)
            cell = jnp.swapaxes(cell, 1, 2).reshape(L, -1, 2 * H)
        return outputs, hidden, cell


if __name__ == "__main__":
    INPUT_DIM = 50      # vocab size
    EMB_DIM = 32
    HID_DIM = 32
    N_LAYERS = 2
    DROPOUT = 0.0
    BIDIRECTIONAL = True
    SEQ = 8
    BATCH = 2

    key = jax.random.PRNGKey(0)
    k_params, k_src = jax.random.split(key)

    enc = Encoder(INPUT_DIM, EMB_DIM, HID_DIM, N_LAYERS, DROPOUT,
                  BIDIRECTIONAL, k_params)

    src = jax.random.randint(k_src, (SEQ, BATCH), 0, INPUT_DIM, jnp.int32)

    outputs, hidden, cell = enc(src)
    jax.block_until_ready((outputs, hidden, cell))

    assert outputs.shape == (SEQ, BATCH, 2 * HID_DIM)
    assert hidden.shape == (N_LAYERS, BATCH, 2 * HID_DIM)
    assert cell.shape == (N_LAYERS, BATCH, 2 * HID_DIM)
    assert bool(jnp.all(jnp.isfinite(outputs)))
    assert bool(jnp.all(jnp.isfinite(hidden)))
    assert bool(jnp.all(jnp.isfinite(cell)))
    print("KERNEL_OK")
</pallas_src>

<mosaic_0001>
module attributes {stable_mosaic.version = 11 : i64} {
  func.func @_lstm_fused_kernel(%arg0: memref<16x64xbf16, #tpu.memory_space<vmem>>, %arg1: memref<64x256xbf16, #tpu.memory_space<vmem>>, %arg2: memref<64x256xbf16, #tpu.memory_space<vmem>>, %arg3: memref<1x256xf32, #tpu.memory_space<vmem>>, %arg4: memref<16x64xf32, #tpu.memory_space<vmem>>, %arg5: memref<2x64xf32, #tpu.memory_space<vmem>>, %arg6: memref<2x64xf32, #tpu.memory_space<vmem>>, %arg7: memref<16x256xf32, #tpu.memory_space<vmem>>) attributes {dimension_semantics = [], scalar_prefetch = 0 : i64, scratch_operands = 1 : i64, tpu.core_type = #tpu.core_type<tc>} {
    %c0 = arith.constant 0 : index
    %c0_0 = arith.constant 0 : index
    %0 = vector.load %arg0[%c0, %c0_0] : memref<16x64xbf16, #tpu.memory_space<vmem>>, vector<16x64xbf16>
    %c0_1 = arith.constant 0 : index
    %c0_2 = arith.constant 0 : index
    %1 = vector.load %arg1[%c0_1, %c0_2] : memref<64x256xbf16, #tpu.memory_space<vmem>>, vector<64x256xbf16>
    %cst = arith.constant dense<0.000000e+00> : vector<16x256xf32>
    %2 = tpu.matmul %0, %1, %cst {dimension_numbers = #tpu.dot_dimension_numbers<[1], [0], [0], [1], [0, 0, 1, 1], [], []>} : vector<16x64xbf16>, vector<64x256xbf16>, vector<16x256xf32> -> vector<16x256xf32>
    %c0_3 = arith.constant 0 : index
    %c0_4 = arith.constant 0 : index
    %3 = vector.load %arg3[%c0_3, %c0_4] : memref<1x256xf32, #tpu.memory_space<vmem>>, vector<1x256xf32>
    %4 = vector.broadcast %3 : vector<1x256xf32> to vector<16x256xf32>
    %5 = arith.addf %2, %4 : vector<16x256xf32>
    %c0_5 = arith.constant 0 : index
    %c0_6 = arith.constant 0 : index
    %6 = vector.load %arg7[%c0_5, %c0_6] : memref<16x256xf32, #tpu.memory_space<vmem>>, vector<16x256xf32>
    tpu.vector_store %arg7[%c0_5, %c0_6], %5 {strides = array<i32>} : memref<16x256xf32, #tpu.memory_space<vmem>>, vector<16x256xf32>,
    %c0_7 = arith.constant 0 : index
    %c0_8 = arith.constant 0 : index
    %7 = vector.load %arg2[%c0_7, %c0_8] : memref<64x256xbf16, #tpu.memory_space<vmem>>, vector<64x256xbf16>
    %cst_9 = arith.constant 0.000000e+00 : f32
    %8 = vector.broadcast %cst_9 : f32 to vector<2x64xf32>
    %cst_10 = arith.constant 0.000000e+00 : f32
    %9 = vector.broadcast %cst_10 : f32 to vector<2x64xf32>
    %c0_i32 = arith.constant 0 : i32
    %c2_i32 = arith.constant 2 : i32
    %10 = arith.muli %c0_i32, %c2_i32 : i32
    %11 = arith.truncf %8 : vector<2x64xf32> to vector<2x64xbf16>
    %cst_11 = arith.constant dense<0.000000e+00> : vector<2x256xf32>
    %12 = tpu.matmul %11, %7, %cst_11 {dimension_numbers = #tpu.dot_dimension_numbers<[1], [0], [0], [1], [0, 0, 1, 1], [], []>} : vector<2x64xbf16>, vector<64x256xbf16>, vector<2x256xf32> -> vector<2x256xf32>
    %13 = arith.index_cast %10 : i32 to index
    %c0_12 = arith.constant 0 : index
    %14 = vector.load %arg7[%13, %c0_12] : memref<16x256xf32, #tpu.memory_space<vmem>>, vector<2x256xf32>
    %15 = arith.addf %12, %14 : vector<2x256xf32>
    %16 = vector.extract_strided_slice %15 {offsets = [0, 0], sizes = [2, 192], strides = [1, 1]} : vector<2x256xf32> to vector<2x192xf32>
    %17 = arith.negf %16 : vector<2x192xf32>
    %18 = math.exp %17 : vector<2x192xf32>
    %cst_13 = arith.constant 1.000000e+00 : f32
    %19 = vector.broadcast %cst_13 : f32 to vector<2x192xf32>
    %20 = arith.addf %19, %18 : vector<2x192xf32>
    %21 = arith.divf %19, %20 : vector<2x192xf32>
    %22 = vector.extract_strided_slice %15 {offsets = [0, 192], sizes = [2, 64], strides = [1, 1]} : vector<2x256xf32> to vector<2x64xf32>
    %23 = math.tanh %22 : vector<2x64xf32>
    %24 = vector.extract_strided_slice %21 {offsets = [0, 0], sizes = [2, 64], strides = [1, 1]} : vector<2x192xf32> to vector<2x64xf32>
    %25 = vector.extract_strided_slice %21 {offsets = [0, 64], sizes = [2, 64], strides = [1, 1]} : vector<2x192xf32> to vector<2x64xf32>
    %26 = vector.extract_strided_slice %21 {offsets = [0, 128], sizes = [2, 64], strides = [1, 1]} : vector<2x192xf32> to vector<2x64xf32>
    %27 = arith.mulf %25, %9 : vector<2x64xf32>
    %28 = arith.mulf %24, %23 : vector<2x64xf32>
    %29 = arith.addf %27, %28 : vector<2x64xf32>
    %30 = math.tanh %29 : vector<2x64xf32>
    %31 = arith.mulf %26, %30 : vector<2x64xf32>
    %32 = arith.index_cast %10 : i32 to index
    %c0_14 = arith.constant 0 : index
    %33 = vector.load %arg4[%32, %c0_14] : memref<16x64xf32, #tpu.memory_space<vmem>>, vector<2x64xf32>
    tpu.vector_store %arg4[%32, %c0_14], %31 {strides = array<i32>} : memref<16x64xf32, #tpu.memory_space<vmem>>, vector<2x64xf32>,
    %c1_i32 = arith.constant 1 : i32
    %c2_i32_15 = arith.constant 2 : i32
    %34 = arith.muli %c1_i32, %c2_i32_15 : i32
    %35 = arith.truncf %31 : vector<2x64xf32> to vector<2x64xbf16>
    %cst_16 = arith.constant dense<0.000000e+00> : vector<2x256xf32>
    %36 = tpu.matmul %35, %7, %cst_16 {dimension_numbers = #tpu.dot_dimension_numbers<[1], [0], [0], [1], [0, 0, 1, 1], [], []>} : vector<2x64xbf16>, vector<64x256xbf16>, vector<2x256xf32> -> vector<2x256xf32>
    %37 = arith.index_cast %34 : i32 to index
    %c0_17 = arith.constant 0 : index
    %38 = vector.load %arg7[%37, %c0_17] : memref<16x256xf32, #tpu.memory_space<vmem>>, vector<2x256xf32>
    %39 = arith.addf %36, %38 : vector<2x256xf32>
    %40 = vector.extract_strided_slice %39 {offsets = [0, 0], sizes = [2, 192], strides = [1, 1]} : vector<2x256xf32> to vector<2x192xf32>
    %41 = arith.negf %40 : vector<2x192xf32>
    %42 = math.exp %41 : vector<2x192xf32>
    %cst_18 = arith.constant 1.000000e+00 : f32
    %43 = vector.broadcast %cst_18 : f32 to vector<2x192xf32>
    %44 = arith.addf %43, %42 : vector<2x192xf32>
    %45 = arith.divf %43, %44 : vector<2x192xf32>
    %46 = vector.extract_strided_slice %39 {offsets = [0, 192], sizes = [2, 64], strides = [1, 1]} : vector<2x256xf32> to vector<2x64xf32>
    %47 = math.tanh %46 : vector<2x64xf32>
    %48 = vector.extract_strided_slice %45 {offsets = [0, 0], sizes = [2, 64], strides = [1, 1]} : vector<2x192xf32> to vector<2x64xf32>
    %49 = vector.extract_strided_slice %45 {offsets = [0, 64], sizes = [2, 64], strides = [1, 1]} : vector<2x192xf32> to vector<2x64xf32>
    %50 = vector.extract_strided_slice %45 {offsets = [0, 128], sizes = [2, 64], strides = [1, 1]} : vector<2x192xf32> to vector<2x64xf32>
    %51 = arith.mulf %49, %29 : vector<2x64xf32>
    %52 = arith.mulf %48, %47 : vector<2x64xf32>
    %53 = arith.addf %51, %52 : vector<2x64xf32>
    %54 = math.tanh %53 : vector<2x64xf32>
    %55 = arith.mulf %50, %54 : vector<2x64xf32>
    %56 = arith.index_cast %34 : i32 to index
    %c0_19 = arith.constant 0 : index
    %57 = vector.load %arg4[%56, %c0_19] : memref<16x64xf32, #tpu.memory_space<vmem>>, vector<2x64xf32>
    tpu.vector_store %arg4[%56, %c0_19], %55 {strides = array<i32>} : memref<16x64xf32, #tpu.memory_space<vmem>>, vector<2x64xf32>,
    %c2_i32_20 = arith.constant 2 : i32
    %c2_i32_21 = arith.constant 2 : i32
    %58 = arith.muli %c2_i32_20, %c2_i32_21 : i32
    %59 = arith.truncf %55 : vector<2x64xf32> to vector<2x64xbf16>
    %cst_22 = arith.constant dense<0.000000e+00> : vector<2x256xf32>
    %60 = tpu.matmul %59, %7, %cst_22 {dimension_numbers = #tpu.dot_dimension_numbers<[1], [0], [0], [1], [0, 0, 1, 1], [], []>} : vector<2x64xbf16>, vector<64x256xbf16>, vector<2x256xf32> -> vector<2x256xf32>
    %61 = arith.index_cast %58 : i32 to index
    %c0_23 = arith.constant 0 : index
    %62 = vector.load %arg7[%61, %c0_23] : memref<16x256xf32, #tpu.memory_space<vmem>>, vector<2x256xf32>
    %63 = arith.addf %60, %62 : vector<2x256xf32>
    %64 = vector.extract_strided_slice %63 {offsets = [0, 0], sizes = [2, 192], strides = [1, 1]} : vector<2x256xf32> to vector<2x192xf32>
    %65 = arith.negf %64 : vector<2x192xf32>
    %66 = math.exp %65 : vector<2x192xf32>
    %cst_24 = arith.constant 1.000000e+00 : f32
    %67 = vector.broadcast %cst_24 : f32 to vector<2x192xf32>
    %68 = arith.addf %67, %66 : vector<2x192xf32>
    %69 = arith.divf %67, %68 : vector<2x192xf32>
    %70 = vector.extract_strided_slice %63 {offsets = [0, 192], sizes = [2, 64], strides = [1, 1]} : vector<2x256xf32> to vector<2x64xf32>
    %71 = math.tanh %70 : vector<2x64xf32>
    %72 = vector.extract_strided_slice %69 {offsets = [0, 0], sizes = [2, 64], strides = [1, 1]} : vector<2x192xf32> to vector<2x64xf32>
    %73 = vector.extract_strided_slice %69 {offsets = [0, 64], sizes = [2, 64], strides = [1, 1]} : vector<2x192xf32> to vector<2x64xf32>
    %74 = vector.extract_strided_slice %69 {offsets = [0, 128], sizes = [2, 64], strides = [1, 1]} : vector<2x192xf32> to vector<2x64xf32>
    %75 = arith.mulf %73, %53 : vector<2x64xf32>
    %76 = arith.mulf %72, %71 : vector<2x64xf32>
    %77 = arith.addf %75, %76 : vector<2x64xf32>
    %78 = math.tanh %77 : vector<2x64xf32>
    %79 = arith.mulf %74, %78 : vector<2x64xf32>
    %80 = arith.index_cast %58 : i32 to index
    %c0_25 = arith.constant 0 : index
    %81 = vector.load %arg4[%80, %c0_25] : memref<16x64xf32, #tpu.memory_space<vmem>>, vector<2x64xf32>
    tpu.vector_store %arg4[%80, %c0_25], %79 {strides = array<i32>} : memref<16x64xf32, #tpu.memory_space<vmem>>, vector<2x64xf32>,
    %c3_i32 = arith.constant 3 : i32
    %c2_i32_26 = arith.constant 2 : i32
    %82 = arith.muli %c3_i32, %c2_i32_26 : i32
    %83 = arith.truncf %79 : vector<2x64xf32> to vector<2x64xbf16>
    %cst_27 = arith.constant dense<0.000000e+00> : vector<2x256xf32>
    %84 = tpu.matmul %83, %7, %cst_27 {dimension_numbers = #tpu.dot_dimension_numbers<[1], [0], [0], [1], [0, 0, 1, 1], [], []>} : vector<2x64xbf16>, vector<64x256xbf16>, vector<2x256xf32> -> vector<2x256xf32>
    %85 = arith.index_cast %82 : i32 to index
    %c0_28 = arith.constant 0 : index
    %86 = vector.load %arg7[%85, %c0_28] : memref<16x256xf32, #tpu.memory_space<vmem>>, vector<2x256xf32>
    %87 = arith.addf %84, %86 : vector<2x256xf32>
    %88 = vector.extract_strided_slice %87 {offsets = [0, 0], sizes = [2, 192], strides = [1, 1]} : vector<2x256xf32> to vector<2x192xf32>
    %89 = arith.negf %88 : vector<2x192xf32>
    %90 = math.exp %89 : vector<2x192xf32>
    %cst_29 = arith.constant 1.000000e+00 : f32
    %91 = vector.broadcast %cst_29 : f32 to vector<2x192xf32>
    %92 = arith.addf %91, %90 : vector<2x192xf32>
    %93 = arith.divf %91, %92 : vector<2x192xf32>
    %94 = vector.extract_strided_slice %87 {offsets = [0, 192], sizes = [2, 64], strides = [1, 1]} : vector<2x256xf32> to vector<2x64xf32>
    %95 = math.tanh %94 : vector<2x64xf32>
    %96 = vector.extract_strided_slice %93 {offsets = [0, 0], sizes = [2, 64], strides = [1, 1]} : vector<2x192xf32> to vector<2x64xf32>
    %97 = vector.extract_strided_slice %93 {offsets = [0, 64], sizes = [2, 64], strides = [1, 1]} : vector<2x192xf32> to vector<2x64xf32>
    %98 = vector.extract_strided_slice %93 {offsets = [0, 128], sizes = [2, 64], strides = [1, 1]} : vector<2x192xf32> to vector<2x64xf32>
    %99 = arith.mulf %97, %77 : vector<2x64xf32>
    %100 = arith.mulf %96, %95 : vector<2x64xf32>
    %101 = arith.addf %99, %100 : vector<2x64xf32>
    %102 = math.tanh %101 : vector<2x64xf32>
    %103 = arith.mulf %98, %102 : vector<2x64xf32>
    %104 = arith.index_cast %82 : i32 to index
    %c0_30 = arith.constant 0 : index
    %105 = vector.load %arg4[%104, %c0_30] : memref<16x64xf32, #tpu.memory_space<vmem>>, vector<2x64xf32>
    tpu.vector_store %arg4[%104, %c0_30], %103 {strides = array<i32>} : memref<16x64xf32, #tpu.memory_space<vmem>>, vector<2x64xf32>,
    %c4_i32 = arith.constant 4 : i32
    %c2_i32_31 = arith.constant 2 : i32
    %106 = arith.muli %c4_i32, %c2_i32_31 : i32
    %107 = arith.truncf %103 : vector<2x64xf32> to vector<2x64xbf16>
    %cst_32 = arith.constant dense<0.000000e+00> : vector<2x256xf32>
    %108 = tpu.matmul %107, %7, %cst_32 {dimension_numbers = #tpu.dot_dimension_numbers<[1], [0], [0], [1], [0, 0, 1, 1], [], []>} : vector<2x64xbf16>, vector<64x256xbf16>, vector<2x256xf32> -> vector<2x256xf32>
    %109 = arith.index_cast %106 : i32 to index
    %c0_33 = arith.constant 0 : index
    %110 = vector.load %arg7[%109, %c0_33] : memref<16x256xf32, #tpu.memory_space<vmem>>, vector<2x256xf32>
    %111 = arith.addf %108, %110 : vector<2x256xf32>
    %112 = vector.extract_strided_slice %111 {offsets = [0, 0], sizes = [2, 192], strides = [1, 1]} : vector<2x256xf32> to vector<2x192xf32>
    %113 = arith.negf %112 : vector<2x192xf32>
    %114 = math.exp %113 : vector<2x192xf32>
    %cst_34 = arith.constant 1.000000e+00 : f32
    %115 = vector.broadcast %cst_34 : f32 to vector<2x192xf32>
    %116 = arith.addf %115, %114 : vector<2x192xf32>
    %117 = arith.divf %115, %116 : vector<2x192xf32>
    %118 = vector.extract_strided_slice %111 {offsets = [0, 192], sizes = [2, 64], strides = [1, 1]} : vector<2x256xf32> to vector<2x64xf32>
    %119 = math.tanh %118 : vector<2x64xf32>
    %120 = vector.extract_strided_slice %117 {offsets = [0, 0], sizes = [2, 64], strides = [1, 1]} : vector<2x192xf32> to vector<2x64xf32>
    %121 = vector.extract_strided_slice %117 {offsets = [0, 64], sizes = [2, 64], strides = [1, 1]} : vector<2x192xf32> to vector<2x64xf32>
    %122 = vector.extract_strided_slice %117 {offsets = [0, 128], sizes = [2, 64], strides = [1, 1]} : vector<2x192xf32> to vector<2x64xf32>
    %123 = arith.mulf %121, %101 : vector<2x64xf32>
    %124 = arith.mulf %120, %119 : vector<2x64xf32>
    %125 = arith.addf %123, %124 : vector<2x64xf32>
    %126 = math.tanh %125 : vector<2x64xf32>
    %127 = arith.mulf %122, %126 : vector<2x64xf32>
    %128 = arith.index_cast %106 : i32 to index
    %c0_35 = arith.constant 0 : index
    %129 = vector.load %arg4[%128, %c0_35] : memref<16x64xf32, #tpu.memory_space<vmem>>, vector<2x64xf32>
    tpu.vector_store %arg4[%128, %c0_35], %127 {strides = array<i32>} : memref<16x64xf32, #tpu.memory_space<vmem>>, vector<2x64xf32>,
    %c5_i32 = arith.constant 5 : i32
    %c2_i32_36 = arith.constant 2 : i32
    %130 = arith.muli %c5_i32, %c2_i32_36 : i32
    %131 = arith.truncf %127 : vector<2x64xf32> to vector<2x64xbf16>
    %cst_37 = arith.constant dense<0.000000e+00> : vector<2x256xf32>
    %132 = tpu.matmul %131, %7, %cst_37 {dimension_numbers = #tpu.dot_dimension_numbers<[1], [0], [0], [1], [0, 0, 1, 1], [], []>} : vector<2x64xbf16>, vector<64x256xbf16>, vector<2x256xf32> -> vector<2x256xf32>
    %133 = arith.index_cast %130 : i32 to index
    %c0_38 = arith.constant 0 : index
    %134 = vector.load %arg7[%133, %c0_38] : memref<16x256xf32, #tpu.memory_space<vmem>>, vector<2x256xf32>
    %135 = arith.addf %132, %134 : vector<2x256xf32>
    %136 = vector.extract_strided_slice %135 {offsets = [0, 0], sizes = [2, 192], strides = [1, 1]} : vector<2x256xf32> to vector<2x192xf32>
    %137 = arith.negf %136 : vector<2x192xf32>
    %138 = math.exp %137 : vector<2x192xf32>
    %cst_39 = arith.constant 1.000000e+00 : f32
    %139 = vector.broadcast %cst_39 : f32 to vector<2x192xf32>
    %140 = arith.addf %139, %138 : vector<2x192xf32>
    %141 = arith.divf %139, %140 : vector<2x192xf32>
    %142 = vector.extract_strided_slice %135 {offsets = [0, 192], sizes = [2, 64], strides = [1, 1]} : vector<2x256xf32> to vector<2x64xf32>
    %143 = math.tanh %142 : vector<2x64xf32>
    %144 = vector.extract_strided_slice %141 {offsets = [0, 0], sizes = [2, 64], strides = [1, 1]} : vector<2x192xf32> to vector<2x64xf32>
    %145 = vector.extract_strided_slice %141 {offsets = [0, 64], sizes = [2, 64], strides = [1, 1]} : vector<2x192xf32> to vector<2x64xf32>
    %146 = vector.extract_strided_slice %141 {offsets = [0, 128], sizes = [2, 64], strides = [1, 1]} : vector<2x192xf32> to vector<2x64xf32>
    %147 = arith.mulf %145, %125 : vector<2x64xf32>
    %148 = arith.mulf %144, %143 : vector<2x64xf32>
    %149 = arith.addf %147, %148 : vector<2x64xf32>
    %150 = math.tanh %149 : vector<2x64xf32>
    %151 = arith.mulf %146, %150 : vector<2x64xf32>
    %152 = arith.index_cast %130 : i32 to index
    %c0_40 = arith.constant 0 : index
    %153 = vector.load %arg4[%152, %c0_40] : memref<16x64xf32, #tpu.memory_space<vmem>>, vector<2x64xf32>
    tpu.vector_store %arg4[%152, %c0_40], %151 {strides = array<i32>} : memref<16x64xf32, #tpu.memory_space<vmem>>, vector<2x64xf32>,
    %c6_i32 = arith.constant 6 : i32
    %c2_i32_41 = arith.constant 2 : i32
    %154 = arith.muli %c6_i32, %c2_i32_41 : i32
    %155 = arith.truncf %151 : vector<2x64xf32> to vector<2x64xbf16>
    %cst_42 = arith.constant dense<0.000000e+00> : vector<2x256xf32>
    %156 = tpu.matmul %155, %7, %cst_42 {dimension_numbers = #tpu.dot_dimension_numbers<[1], [0], [0], [1], [0, 0, 1, 1], [], []>} : vector<2x64xbf16>, vector<64x256xbf16>, vector<2x256xf32> -> vector<2x256xf32>
    %157 = arith.index_cast %154 : i32 to index
    %c0_43 = arith.constant 0 : index
    %158 = vector.load %arg7[%157, %c0_43] : memref<16x256xf32, #tpu.memory_space<vmem>>, vector<2x256xf32>
    %159 = arith.addf %156, %158 : vector<2x256xf32>
    %160 = vector.extract_strided_slice %159 {offsets = [0, 0], sizes = [2, 192], strides = [1, 1]} : vector<2x256xf32> to vector<2x192xf32>
    %161 = arith.negf %160 : vector<2x192xf32>
    %162 = math.exp %161 : vector<2x192xf32>
    %cst_44 = arith.constant 1.000000e+00 : f32
    %163 = vector.broadcast %cst_44 : f32 to vector<2x192xf32>
    %164 = arith.addf %163, %162 : vector<2x192xf32>
    %165 = arith.divf %163, %164 : vector<2x192xf32>
    %166 = vector.extract_strided_slice %159 {offsets = [0, 192], sizes = [2, 64], strides = [1, 1]} : vector<2x256xf32> to vector<2x64xf32>
    %167 = math.tanh %166 : vector<2x64xf32>
    %168 = vector.extract_strided_slice %165 {offsets = [0, 0], sizes = [2, 64], strides = [1, 1]} : vector<2x192xf32> to vector<2x64xf32>
    %169 = vector.extract_strided_slice %165 {offsets = [0, 64], sizes = [2, 64], strides = [1, 1]} : vector<2x192xf32> to vector<2x64xf32>
    %170 = vector.extract_strided_slice %165 {offsets = [0, 128], sizes = [2, 64], strides = [1, 1]} : vector<2x192xf32> to vector<2x64xf32>
    %171 = arith.mulf %169, %149 : vector<2x64xf32>
    %172 = arith.mulf %168, %167 : vector<2x64xf32>
    %173 = arith.addf %171, %172 : vector<2x64xf32>
    %174 = math.tanh %173 : vector<2x64xf32>
    %175 = arith.mulf %170, %174 : vector<2x64xf32>
    %176 = arith.index_cast %154 : i32 to index
    %c0_45 = arith.constant 0 : index
    %177 = vector.load %arg4[%176, %c0_45] : memref<16x64xf32, #tpu.memory_space<vmem>>, vector<2x64xf32>
    tpu.vector_store %arg4[%176, %c0_45], %175 {strides = array<i32>} : memref<16x64xf32, #tpu.memory_space<vmem>>, vector<2x64xf32>,
    %c7_i32 = arith.constant 7 : i32
    %c2_i32_46 = arith.constant 2 : i32
    %178 = arith.muli %c7_i32, %c2_i32_46 : i32
    %179 = arith.truncf %175 : vector<2x64xf32> to vector<2x64xbf16>
    %cst_47 = arith.constant dense<0.000000e+00> : vector<2x256xf32>
    %180 = tpu.matmul %179, %7, %cst_47 {dimension_numbers = #tpu.dot_dimension_numbers<[1], [0], [0], [1], [0, 0, 1, 1], [], []>} : vector<2x64xbf16>, vector<64x256xbf16>, vector<2x256xf32> -> vector<2x256xf32>
    %181 = arith.index_cast %178 : i32 to index
    %c0_48 = arith.constant 0 : index
    %182 = vector.load %arg7[%181, %c0_48] : memref<16x256xf32, #tpu.memory_space<vmem>>, vector<2x256xf32>
    %183 = arith.addf %180, %182 : vector<2x256xf32>
    %184 = vector.extract_strided_slice %183 {offsets = [0, 0], sizes = [2, 192], strides = [1, 1]} : vector<2x256xf32> to vector<2x192xf32>
    %185 = arith.negf %184 : vector<2x192xf32>
    %186 = math.exp %185 : vector<2x192xf32>
    %cst_49 = arith.constant 1.000000e+00 : f32
    %187 = vector.broadcast %cst_49 : f32 to vector<2x192xf32>
    %188 = arith.addf %187, %186 : vector<2x192xf32>
    %189 = arith.divf %187, %188 : vector<2x192xf32>
    %190 = vector.extract_strided_slice %183 {offsets = [0, 192], sizes = [2, 64], strides = [1, 1]} : vector<2x256xf32> to vector<2x64xf32>
    %191 = math.tanh %190 : vector<2x64xf32>
    %192 = vector.extract_strided_slice %189 {offsets = [0, 0], sizes = [2, 64], strides = [1, 1]} : vector<2x192xf32> to vector<2x64xf32>
    %193 = vector.extract_strided_slice %189 {offsets = [0, 64], sizes = [2, 64], strides = [1, 1]} : vector<2x192xf32> to vector<2x64xf32>
    %194 = vector.extract_strided_slice %189 {offsets = [0, 128], sizes = [2, 64], strides = [1, 1]} : vector<2x192xf32> to vector<2x64xf32>
    %195 = arith.mulf %193, %173 : vector<2x64xf32>
    %196 = arith.mulf %192, %191 : vector<2x64xf32>
    %197 = arith.addf %195, %196 : vector<2x64xf32>
    %198 = math.tanh %197 : vector<2x64xf32>
    %199 = arith.mulf %194, %198 : vector<2x64xf32>
    %200 = arith.index_cast %178 : i32 to index
    %c0_50 = arith.constant 0 : index
    %201 = vector.load %arg4[%200, %c0_50] : memref<16x64xf32, #tpu.memory_space<vmem>>, vector<2x64xf32>
    tpu.vector_store %arg4[%200, %c0_50], %199 {strides = array<i32>} : memref<16x64xf32, #tpu.memory_space<vmem>>, vector<2x64xf32>,
    %c8_i32 = arith.constant 8 : i32
    %c0_51 = arith.constant 0 : index
    %c0_52 = arith.constant 0 : index
    %202 = vector.load %arg5[%c0_51, %c0_52] : memref<2x64xf32, #tpu.memory_space<vmem>>, vector<2x64xf32>
    tpu.vector_store %arg5[%c0_51, %c0_52], %199 {strides = array<i32>} : memref<2x64xf32, #tpu.memory_space<vmem>>, vector<2x64xf32>,
    %c0_53 = arith.constant 0 : index
    %c0_54 = arith.constant 0 : index
    %203 = vector.load %arg6[%c0_53, %c0_54] : memref<2x64xf32, #tpu.memory_space<vmem>>, vector<2x64xf32>
    tpu.vector_store %arg6[%c0_53, %c0_54], %197 {strides = array<i32>} : memref<2x64xf32, #tpu.memory_space<vmem>>, vector<2x64xf32>,
    return
  }
}

</mosaic_0001>

<bundles_post_ra>
// kernel: tpu_custom_call.1
= control target key start
LH: loop header
LB: loop body
LE: loop exit
PB: predicated region body
PF: predicated region fallthrough
CT: control target
= control target key end

     0   :  { %12 = vsyncpa [#allocation4], 0  ;;  %s1629_s0 = inlined_call_operand.hbm [shape: bf16[16,64], index: 0, kind: input, shape index: {}]   ;;  %s1630_s1 = inlined_call_operand.hbm [shape: bf16[64,256], index: 1, kind: input, shape index: {}]   ;;  %s1631_s2 = inlined_call_operand.hbm [shape: bf16[64,256], index: 2, kind: input, shape index: {}]   ;;  %s1632_s3 = inlined_call_operand.vmem [shape: f32[1,256], index: 3, kind: input, shape index: {}]   ;;  %s1633_s4 = inlined_call_operand.hbm [shape: f32[16,64], index: 4, kind: output, shape index: {0}]   ;;  %s1634_s5 = inlined_call_operand.hbm [shape: f32[2,64], index: 5, kind: output, shape index: {1}]   ;;  %s1635_s6 = inlined_call_operand.hbm [shape: f32[2,64], index: 6, kind: output, shape index: {2}]  }
   0x1   :  { %13 = vsyncpa [#allocation7], 0 }
   0x2   :  { %14 = vsyncpa [#allocation5], 0  ;;  %s33_s23 = sshll.u32 %s1630_s1, 4  ;;  %s34_s23 = int_to_ptr.hbm [resolvable:$true] %s33_s23 }
   0x3   :  { %15 = vsyncpa [#allocation11], 0  ;;  %s1396_s24 = smov [#allocation6]   ;;  %s20_s28 = sshll.u32 %s1629_s0, 4  ;;  %s21_s28 = int_to_ptr.hbm [resolvable:$true] %s20_s28 }
   0x4   :  { %s35_s25 = sshll.u32 %s1396_s24, 4  ;;  %s1397_s29 = smov 128   ;;  %s36_s25 = int_to_ptr.vmem [resolvable:$true] %s35_s25 }
   0x5   :  { %s1398_s30 = smov 8   ;;  %s1399_s7 = smov [#allocation3]  }
   0x6   :  { %41 = dma.hbm_to_vmem [thread:$0]  %s34_s23, 1024, %s36_s25, [#allocation7], %s1397_s29, %s1397_s29, %s1398_s30  }
   0x7   :  { %s22_s8 = sshll.u32 %s1399_s7, 4  ;;  %s1400_s1 = smov 64   ;;  %s23_s8 = int_to_ptr.vmem [resolvable:$true] %s22_s8 }
   0x8   :  { %s1401_s9 = smov 4   ;;  %s46_s12 = sshll.u32 %s1631_s2, 4  ;;  %s47_s12 = int_to_ptr.hbm [resolvable:$true] %s46_s12 }
   0x9   :  { %28 = dma.hbm_to_vmem [thread:$0]  %s21_s28, 128, %s23_s8, [#allocation4], %s1400_s1, %s1400_s1, %s1401_s9  }
   0xa   :  { %s1402_s0 = smov [#allocation8]  }
   0xb   :  { %s48_s13 = sshll.u32 %s1402_s0, 4  ;;  %s49_s13 = int_to_ptr.vmem [resolvable:$true] %s48_s13 }
   0xc   :  { %54 = dma.hbm_to_vmem [thread:$0]  %s47_s12, 1024, %s49_s13, [#allocation7], %s1397_s29, %s1397_s29, %s1398_s30  }
   0xd   :  { %1388 = dma.done.wait [#allocation4], 128  }
   0xe   :  { %1389 = vsyncadd [#allocation4], 4294967168 }
   0xf   :  { %1390 = dma.done.wait [#allocation7], 2048  }
  0x10   :  { %1391 = vsyncadd [#allocation7], 4294965248  ;;  %v1127_v0 = vld [vmem:[#allocation6 + $0x34] sm:$0xf]  ;;  %v1052_v1 = vld [vmem:[#allocation6 + $0x38] sm:$0xf0] }
  0x11   :  { %v1135_v2 = vld [vmem:[#allocation8 + $0x34] sm:$0xf]  ;;  %v1055_v3 = vor.u32 %v1127_v0, %v1052_v1  ;;  %v1086_v4 = vld [vmem:[#allocation8 + $0x38] sm:$0xf0]  ;;  %v1125_v5 = vld [vmem:[#allocation6 + $0x24] sm:$0xf] }
  0x12   :  { %v1044_v6 = vld [vmem:[#allocation6 + $0x28] sm:$0xf0]  ;;  %v1459_v7 = vor.u32 %v1135_v2, %v1086_v4  ;;  %v1133_v8 = vld [vmem:[#allocation8 + $0x24] sm:$0xf]  ;;  %v1123_v12 = vld [vmem:[#allocation6 + $0x14] sm:$0xf] }
  0x13   :  { %v1078_v9 = vld [vmem:[#allocation8 + $0x28] sm:$0xf0]  ;;  %153 = vmatpush.bf16.msra.mxu1 %v1055_v3  ;;  %v1047_v10 = vor.u32 %v1125_v5, %v1044_v6  ;;  %v1036_v13 = vld [vmem:[#allocation6 + $0x18] sm:$0xf0]  ;;  %v1131_v14 = vld [vmem:[#allocation8 + $0x14] sm:$0xf] }
  0x14   :  { %237 = vmatpush.bf16.msra.mxu3 %v1459_v7  ;;  %v1462_v11 = vor.u32 %v1133_v8, %v1078_v9  ;;  %v1070_v15 = vld [vmem:[#allocation8 + $0x18] sm:$0xf0]  ;;  %v1050_v16 = vld [vmem:[#allocation6 + $0x30] sm:$0xf]  ;;  %v1128_v17 = vld [vmem:[#allocation6 + $0x34] sm:$0xf0]  ;;  %v1039_v20 = vor.u32 %v1123_v12, %v1036_v13 }
  0x15   :  { %v1042_v18 = vld [vmem:[#allocation6 + $0x20] sm:$0xf]  ;;  %v1126_v19 = vld [vmem:[#allocation6 + $0x24] sm:$0xf0]  ;;  %v1121_v21 = vld [vmem:[#allocation6 + $0x4] sm:$0xf]  ;;  %v1051_v22 = vor.u32 %v1128_v17, %v1050_v16  ;;  %v1465_v25 = vor.u32 %v1131_v14, %v1070_v15 }
  0x16   :  { %v1084_v23 = vld [vmem:[#allocation8 + $0x30] sm:$0xf]  ;;  %v1136_v24 = vld [vmem:[#allocation8 + $0x34] sm:$0xf0]  ;;  %v1028_v26 = vld [vmem:[#allocation6 + $0x8] sm:$0xf0]  ;;  %v1043_v32 = vor.u32 %v1126_v19, %v1042_v18 }
  0x17   :  { %154 = vmatpush.bf16.msra.mxu1 %v1047_v10  ;;  %v1467_v27 = vor.u32 %v1136_v24, %v1084_v23  ;;  %v1076_v28 = vld [vmem:[#allocation8 + $0x20] sm:$0xf]  ;;  %v1134_v29 = vld [vmem:[#allocation8 + $0x24] sm:$0xf0]  ;;  %v1129_v30 = vld [vmem:[#allocation8 + $0x4] sm:$0xf]  ;;  %139 = vmatpush.bf16.msra.mxu0 %v1051_v22  ;;  %v1031_v36 = vor.u32 %v1121_v21, %v1028_v26 }
  0x18   :  { %238 = vmatpush.bf16.msra.mxu3 %v1462_v11  ;;  %v1062_v31 = vld [vmem:[#allocation8 + $0x8] sm:$0xf0]  ;;  %v1034_v33 = vld [vmem:[#allocation6 + $0x10] sm:$0xf]  ;;  %v1124_v34 = vld [vmem:[#allocation6 + $0x14] sm:$0xf0]  ;;  %v1470_v35 = vor.u32 %v1134_v29, %v1076_v28 }
  0x19   :  { %224 = vmatpush.bf16.msra.mxu2 %v1467_v27  ;;  %v1068_v37 = vld [vmem:[#allocation8 + $0x10] sm:$0xf]  ;;  %v1132_v38 = vld [vmem:[#allocation8 + $0x14] sm:$0xf0]  ;;  %v1473_v39 = vor.u32 %v1129_v30, %v1062_v31  ;;  %v1035_v40 = vor.u32 %v1124_v34, %v1034_v33  ;;  %v1026_v42 = vld [vmem:[#allocation6] sm:$0xf] }
  0x1a   :  { %v1120_v41 = vld [vmem:[#allocation3] sm:$0xff]  ;;  %v1122_v43 = vld [vmem:[#allocation6 + $0x4] sm:$0xf0]  ;;  %v1476_v44 = vor.u32 %v1132_v38, %v1068_v37  ;;  %vm131_vm0 = vcmask 523264   ;;  %v1060_v45 = vld [vmem:[#allocation8] sm:$0xf] }
  0x1b   :  { %155 = vmatpush.bf16.msra.mxu1 %v1039_v20  ;;  %140 = vmatpush.bf16.msra.mxu0 %v1043_v32  ;;  %v1130_v46 = vld [vmem:[#allocation8 + $0x4] sm:$0xf0]  ;;  %v1027_v47 = vor.u32 %v1122_v43, %v1026_v42  ;;  %v1403_v49 = vmov 0   ;;  %v80_v50 = vld [vmem:[%s1632_s3] sm:$0x3]  ;;  %vm302_vm9 = vcmask 517120  }
  0x1c   :  { %239 = vmatpush.bf16.msra.mxu3 %v1465_v25  ;;  %v1483_v48 = vor.u32 %v1130_v46, %v1060_v45  ;;  %v83_v51 = vperm.slane %v80_v50, 1  ;;  %v82_v54 = vperm.slane %v80_v50, 0  ;;  %s1404_s3 = smov [#allocation9]   ;;  %s975_s18 = sshll.u32 %s1633_s4, 4  ;;  %s976_s18 = int_to_ptr.hbm [resolvable:$true] %s975_s18 }
  0x1d   :  { %225 = vmatpush.bf16.msra.mxu2 %v1470_v35  ;;  %s973_s15 = sshll.u32 %s1404_s3, 4  ;;  %s1405_s19 = smov [#allocation10]   ;;  %s974_s15 = int_to_ptr.vmem [resolvable:$true] %s973_s15 }
  0x1e   :  { %s987_s20 = sshll.u32 %s1405_s19, 4  ;;  %s989_s23 = sshll.u32 %s1634_s5, 4  ;;  %s988_s20 = int_to_ptr.vmem [resolvable:$true] %s987_s20  ;;  %s990_s23 = int_to_ptr.hbm [resolvable:$true] %s989_s23 }
  0x1f   :  { %156 = vmatpush.bf16.msra.mxu1 %v1031_v36  ;;  %141 = vmatpush.bf16.msra.mxu0 %v1035_v40  ;;  %s1406_s4 = smov [#allocation12]   ;;  %s1000_s26 = sshll.u32 %s1635_s6, 4  ;;  %s1001_s26 = int_to_ptr.hbm [resolvable:$true] %s1000_s26 }
  0x20   :  { %240 = vmatpush.bf16.msra.mxu3 %v1473_v39  ;;  %s998_s24 = sshll.u32 %s1406_s4, 4  ;;  %s999_s24 = int_to_ptr.vmem [resolvable:$true] %s998_s24 }
  0x21   :  { %226 = vmatpush.bf16.msra.mxu2 %v1476_v44 }
  0x22   :  { %1057 = vmatmul.msk.bf16.vlgmr.msra.gmra.mxu1 %vm131_vm0, %v1120_v41 }
  0x23   :  { %333 = vmatpush.bf16.msrb.mxu1 %v1459_v7  ;;  %241 = vmatmul.bf16.vlgmr.msra.gmra.mxu3 %v1403_v49 }
  0x24   :  { %428 = vmatpush.bf16.msrb.mxu3 %v1459_v7  ;;  %142 = vmatpush.bf16.msra.mxu0 %v1027_v47 }
  0x25   :  { %227 = vmatpush.bf16.msra.mxu2 %v1483_v48 }
  0x27   :  { %334 = vmatpush.bf16.msrb.mxu1 %v1462_v11  ;;  %1056 = vmatmul.msk.bf16.vlgmr.msra.gmra.mxu0 %vm131_vm0, %v1120_v41 }
  0x28   :  { %429 = vmatpush.bf16.msrb.mxu3 %v1462_v11  ;;  %320 = vmatpush.bf16.msrb.mxu0 %v1467_v27 }
  0x29   :  { %415 = vmatpush.bf16.msrb.mxu2 %v1467_v27 }
  0x2a   :  { %228 = vmatmul.bf16.vlgmr.msra.gmra.mxu2 %v1403_v49 }
  0x2b   :  { %335 = vmatpush.bf16.msrb.mxu1 %v1465_v25 }
  0x2c   :  { %430 = vmatpush.bf16.msrb.mxu3 %v1465_v25  ;;  %321 = vmatpush.bf16.msrb.mxu0 %v1470_v35 }
  0x2d   :  { %416 = vmatpush.bf16.msrb.mxu2 %v1470_v35 }
  0x2f   :  { %336 = vmatpush.bf16.msrb.mxu1 %v1473_v39 }
  0x30   :  { %431 = vmatpush.bf16.msrb.mxu3 %v1473_v39  ;;  %322 = vmatpush.bf16.msrb.mxu0 %v1476_v44 }
  0x31   :  { %417 = vmatpush.bf16.msrb.mxu2 %v1476_v44 }
  0x33   :  { %523 = vmatpush.bf16.msra.mxu1 %v1459_v7 }
  0x34   :  { %612 = vmatpush.bf16.msra.mxu3 %v1459_v7  ;;  %323 = vmatpush.bf16.msrb.mxu0 %v1483_v48 }
  0x35   :  { %418 = vmatpush.bf16.msrb.mxu2 %v1483_v48 }
  0x37   :  { %524 = vmatpush.bf16.msra.mxu1 %v1462_v11 }
  0x38   :  { %613 = vmatpush.bf16.msra.mxu3 %v1462_v11  ;;  %510 = vmatpush.bf16.msra.mxu0 %v1467_v27 }
  0x39   :  { %599 = vmatpush.bf16.msra.mxu2 %v1467_v27 }
  0x3b   :  { %525 = vmatpush.bf16.msra.mxu1 %v1465_v25 }
  0x3c   :  { %614 = vmatpush.bf16.msra.mxu3 %v1465_v25  ;;  %511 = vmatpush.bf16.msra.mxu0 %v1470_v35 }
  0x3d   :  { %600 = vmatpush.bf16.msra.mxu2 %v1470_v35 }
  0x3f   :  { %526 = vmatpush.bf16.msra.mxu1 %v1473_v39 }
  0x40   :  { %615 = vmatpush.bf16.msra.mxu3 %v1473_v39  ;;  %512 = vmatpush.bf16.msra.mxu0 %v1476_v44 }
  0x41   :  { %601 = vmatpush.bf16.msra.mxu2 %v1476_v44 }
  0x44   :  { %513 = vmatpush.bf16.msra.mxu0 %v1483_v48 }
  0x45   :  { %602 = vmatpush.bf16.msra.mxu2 %v1483_v48 }
  0x9f   :  { %v158_v52 = vpop.f32.mrf.mxu1 }
  0xa0   :  { %v159_v53 = vadd.f32 %v158_v52, %v83_v51 }
  0xa2   :  { %164 = vst [vmem:[#allocation2] sm:$0xff] %v159_v53 }
  0xa4   :  { %v144_v55 = vpop.f32.mrf.mxu0 }
  0xa5   :  { %v145_v57 = vadd.f32 %v144_v55, %v82_v54 }
  0xa6   :  { %v242_v56 = vpop.f32.mrf.mxu3 }
  0xa7   :  { %v160_v58 = vpop.f32.mrf.mxu1  ;;  %163 = vst [vmem:[#allocation2 + $0x10] sm:$0xff] %v145_v57 }
  0xa8   :  { %v161_v59 = vadd.f32 %v160_v58, %v83_v51 }
  0xa9   :  { %v176_v60 = vld [vmem:[#allocation2] sm:$0x3]  ;;  %v306_v49 = vld [vmem:[#allocation2] sm:$0xc] }
  0xaa   :  { %v243_v61 = vadd.f32 %v242_v56, %v176_v60  ;;  %166 = vst [vmem:[#allocation2 + $0x8] sm:$0xff] %v161_v59  ;;  %v310_v50 = vrot.slane %v306_v49, 2 }
  0xac   :  { %1148 = vtanh.f32 %v243_v61  ;;  %v146_v63 = vpop.f32.mrf.mxu0  ;;  %v1091_v29 = vmul.f32 -1.442695, %v243_v61 }
  0xad   :  { %v229_v62 = vpop.f32.mrf.mxu2  ;;  %v147_v1 = vadd.f32 %v146_v63, %v82_v54 }
  0xae   :  { %v244_v0 = vpop.f32.mrf.mxu3  ;;  %v175_v4 = vld [vmem:[#allocation2 + $0x10] sm:$0x3]  ;;  %v305_v57 = vld [vmem:[#allocation2 + $0x10] sm:$0xc] }
  0xaf   :  { %165 = vst [vmem:[#allocation2 + $0x18] sm:$0xff] %v147_v1  ;;  %v230_v5 = vadd.f32 %v229_v62, %v175_v4  ;;  %v309_v58 = vrot.slane %v305_v57, 2 }
  0xb1   :  { %v1090_v6 = vmul.f32 -1.442695, %v230_v5 }
  0xb2   :  { %v1149_v2 = vpop.eup %1148 }
  0xb3   :  { %287 = vrot.lane.b32.xlu0 %v1149_v2, %s1400_s1  ;;  %1150 = vpow2.f32 %v1090_v6 }
  0xb5   :  { %v231_v3 = vpop.f32.mrf.mxu2 }
  0xb9   :  { %v1151_v8 = vpop.eup %1150 }
  0xba   :  { %v252_v9 = vadd.f32 1.0, %v1151_v8 }
  0xbc   :  { %1152 = vrcp.f32 %v252_v9  ;;  %vm259_vm1 = vweird.f32 %v252_v9  ;;  %v265_v15 = vand.u32 2147483648, %v252_v9  ;;  %v263_v17 = vand.u32 2147483647, %v252_v9 }
  0xbe   :  { %v266_v18 = vor.u32 1.1754944e-38, %v265_v15  ;;  %vm264_vm4 = vcmp.eq.f32.partialorder %v263_v17, 8.507059e+37 }
  0xc2   :  { %v1153_v10 = vpop.eup %1152 }
  0xc3   :  { %v255_v12 = vmul.f32 %v1153_v10, %v252_v9  ;;  %vm260_vm2 = vweird.f32 %v1153_v10 }
  0xc4   :  { %vm261_vm3 = vmor %vm259_vm1, %vm260_vm2 }
  0xc5   :  { %v256_v13 = vsub.f32 1.0, %v255_v12 }
  0xc7   :  { %v257_v14 = vmul.f32 %v1153_v10, %v256_v13 }
  0xc9   :  { %v258_v16 = vadd.f32 %v1153_v10, %v257_v14 }
  0xcb   :  { %v262_v19 = vsel %vm261_vm3, %v1153_v10, %v258_v16 }
  0xcc   :  { %v267_v21 = vsel %vm264_vm4, %v266_v18, %v262_v19 }
  0xcd   :  { %v285_v23 = vmul.f32 0.0, %v267_v21 }
 0x125   :  { %v288_v20 = vpop.permute.xlu0 %287 }
 0x126   :  { %v290_v22 = vmul.f32 %v288_v20, %v267_v21 }
 0x128   :  { %292 = vrot.lane.b32.xlu0 %v290_v22, %s1400_s1 }
 0x19a   :  { %v293_v24 = vpop.permute.xlu0 %292 }
 0x19b   :  { %v1522_v26 = vadd.f32 %v293_v24, %v285_v23 }
 0x19d   :  { %1154 = vtanh.f32 %v1522_v26 }
 0x19e   :  { %1156 = vpow2.f32 %v1091_v29 }
 0x1a3   :  { %v1155_v28 = vpop.eup %1154 }
 0x1a4   :  { %298 = vrot.lane.b32.xlu1 %v1155_v28, %s1400_s1  ;;  %v1157_v30 = vpop.eup %1156 }
 0x1a5   :  { %v253_v31 = vadd.f32 1.0, %v1157_v30 }
 0x1a7   :  { %1158 = vrcp.f32 %v253_v31  ;;  %v280_v38 = vand.u32 2147483648, %v253_v31  ;;  %vm274_vm6 = vweird.f32 %v253_v31  ;;  %v278_v40 = vand.u32 2147483647, %v253_v31 }
 0x1a9   :  { %v281_v42 = vor.u32 1.1754944e-38, %v280_v38  ;;  %vm279_vm8 = vcmp.eq.f32.partialorder %v278_v40, 8.507059e+37 }
 0x1ad   :  { %v1159_v32 = vpop.eup %1158 }
 0x1ae   :  { %v270_v33 = vmul.f32 %v1159_v32, %v253_v31  ;;  %vm275_vm5 = vweird.f32 %v1159_v32 }
 0x1af   :  { %vm276_vm7 = vmor %vm274_vm6, %vm275_vm5 }
 0x1b0   :  { %v271_v34 = vsub.f32 1.0, %v270_v33 }
 0x1b2   :  { %v272_v36 = vmul.f32 %v1159_v32, %v271_v34 }
 0x1b4   :  { %v273_v37 = vadd.f32 %v1159_v32, %v272_v36  ;;  %v401_v36 = vld [vmem:[#allocation2] sm:$0x30] }
 0x1b6   :  { %v277_v41 = vsel %vm276_vm7, %v1159_v32, %v273_v37  ;;  %v405_v37 = vrot.slane %v401_v36, 4 }
 0x1b7   :  { %v282_v43 = vsel %vm279_vm8, %v281_v42, %v277_v41 }
 0x216   :  { %v299_v45 = vpop.permute.xlu1 %298 }
 0x217   :  { %v301_v46 = vmul.f32 %v299_v45, %v282_v43 }
 0x219   :  { %303 = vst.msk [vmem:[#allocation9] sm:$0x3] %vm302_vm9, %v301_v46  ;;  %v304_v47 = vpack.c.bf16 %v301_v46, %v301_v46  ;;  %v400_v46 = vld [vmem:[#allocation2 + $0x10] sm:$0x30] }
 0x21b   :  { %1092 = vmatmul.msk.bf16.vlgmr.msrb.gmra.mxu0 %vm131_vm0, %v304_v47  ;;  %1093 = vmatmul.msk.bf16.vlgmr.msrb.gmra.mxu1 %vm131_vm0, %v304_v47  ;;  %v404_v47 = vrot.slane %v400_v46, 4 }
 0x21c   :  { %707 = vmatpush.bf16.msrb.mxu1 %v1459_v7  ;;  %694 = vmatpush.bf16.msrb.mxu0 %v1467_v27 }
 0x220   :  { %708 = vmatpush.bf16.msrb.mxu1 %v1462_v11  ;;  %695 = vmatpush.bf16.msrb.mxu0 %v1470_v35 }
 0x224   :  { %709 = vmatpush.bf16.msrb.mxu1 %v1465_v25  ;;  %696 = vmatpush.bf16.msrb.mxu0 %v1476_v44 }
 0x228   :  { %710 = vmatpush.bf16.msrb.mxu1 %v1473_v39  ;;  %697 = vmatpush.bf16.msrb.mxu0 %v1483_v48 }
 0x298   :  { %v325_v51 = vpop.f32.mrf.mxu0  ;;  %v338_v52 = vpop.f32.mrf.mxu1 }
 0x299   :  { %v339_v53 = vadd.f32 %v338_v52, %v310_v50  ;;  %v326_v59 = vadd.f32 %v325_v51, %v309_v58 }
 0x29b   :  { %1160 = vtanh.f32 %v339_v53  ;;  %v1094_v60 = vmul.f32 -1.442695, %v326_v59  ;;  %v1095_v17 = vmul.f32 -1.442695, %v339_v53 }
 0x29d   :  { %1162 = vpow2.f32 %v1094_v60 }
 0x2a0   :  { %v327_v54 = vpop.f32.mrf.mxu0  ;;  %v340_v55 = vpop.f32.mrf.mxu1 }
 0x2a1   :  { %v1161_v56 = vpop.eup %1160 }
 0x2a2   :  { %383 = vrot.lane.b32.xlu1 %v1161_v56, %s1400_s1 }
 0x2a3   :  { %v1163_v61 = vpop.eup %1162 }
 0x2a4   :  { %v348_v62 = vadd.f32 1.0, %v1163_v61 }
 0x2a6   :  { %1164 = vrcp.f32 %v348_v62  ;;  %v361_v4 = vand.u32 2147483648, %v348_v62  ;;  %vm355_vm11 = vweird.f32 %v348_v62  ;;  %v359_v5 = vand.u32 2147483647, %v348_v62 }
 0x2a8   :  { %v362_v8 = vor.u32 1.1754944e-38, %v361_v4  ;;  %vm360_vm13 = vcmp.eq.f32.partialorder %v359_v5, 8.507059e+37 }
 0x2ac   :  { %v1165_v63 = vpop.eup %1164 }
 0x2ad   :  { %v351_v0 = vmul.f32 %v1165_v63, %v348_v62  ;;  %vm356_vm10 = vweird.f32 %v1165_v63 }
 0x2ae   :  { %vm357_vm12 = vmor %vm355_vm11, %vm356_vm10 }
 0x2af   :  { %v352_v1 = vsub.f32 1.0, %v351_v0 }
 0x2b1   :  { %v353_v2 = vmul.f32 %v1165_v63, %v352_v1 }
 0x2b3   :  { %v354_v3 = vadd.f32 %v1165_v63, %v353_v2 }
 0x2b5   :  { %v358_v6 = vsel %vm357_vm12, %v1165_v63, %v354_v3 }
 0x2b6   :  { %v363_v10 = vsel %vm360_vm13, %v362_v8, %v358_v6 }
 0x2b7   :  { %v381_v13 = vmul.f32 %v363_v10, %v1522_v26 }
 0x314   :  { %v384_v9 = vpop.permute.xlu1 %383 }
 0x315   :  { %v386_v12 = vmul.f32 %v384_v9, %v363_v10 }
 0x317   :  { %388 = vrot.lane.b32.xlu2 %v386_v12, %s1400_s1 }
 0x371   :  { %v389_v14 = vpop.permute.xlu2 %388 }
 0x372   :  { %v1540_v15 = vadd.f32 %v389_v14, %v381_v13 }
 0x374   :  { %1166 = vtanh.f32 %v1540_v15 }
 0x375   :  { %1168 = vpow2.f32 %v1095_v17 }
 0x37a   :  { %v1167_v16 = vpop.eup %1166 }
 0x37b   :  { %394 = vrot.lane.b32.xlu2 %v1167_v16, %s1400_s1  ;;  %v1169_v18 = vpop.eup %1168 }
 0x37c   :  { %v349_v19 = vadd.f32 1.0, %v1169_v18 }
 0x37e   :  { %1170 = vrcp.f32 %v349_v19  ;;  %v376_v26 = vand.u32 2147483648, %v349_v19  ;;  %vm370_vm15 = vweird.f32 %v349_v19  ;;  %v374_v28 = vand.u32 2147483647, %v349_v19 }
 0x380   :  { %v377_v30 = vor.u32 1.1754944e-38, %v376_v26  ;;  %vm375_vm2 = vcmp.eq.f32.partialorder %v374_v28, 8.507059e+37 }
 0x384   :  { %v1171_v20 = vpop.eup %1170 }
 0x385   :  { %v366_v21 = vmul.f32 %v1171_v20, %v349_v19  ;;  %vm371_vm14 = vweird.f32 %v1171_v20 }
 0x386   :  { %vm372_vm1 = vmor %vm370_vm15, %vm371_vm14 }
 0x387   :  { %v367_v22 = vsub.f32 1.0, %v366_v21 }
 0x389   :  { %v368_v23 = vmul.f32 %v1171_v20, %v367_v22 }
 0x38b   :  { %v369_v24 = vadd.f32 %v1171_v20, %v368_v23  ;;  %v496_v23 = vld [vmem:[#allocation2] sm:$0xc0] }
 0x38d   :  { %v373_v29 = vsel %vm372_vm1, %v1171_v20, %v369_v24  ;;  %v500_v24 = vrot.slane %v496_v23, 6 }
 0x38e   :  { %v378_v31 = vsel %vm375_vm2, %v377_v30, %v373_v29 }
 0x3d5   :  { %v395_v32 = vpop.permute.xlu2 %394 }
 0x3d6   :  { %v397_v33 = vmul.f32 %v395_v32, %v378_v31 }
 0x3d8   :  { %398 = vst.msk [vmem:[#allocation9 + $0x2] sm:$0x3] %vm302_vm9, %v397_v33  ;;  %v399_v34 = vpack.c.bf16 %v397_v33, %v397_v33 }
 0x3da   :  { %1096 = vmatmul.msk.bf16.vlgmr.msrb.gmra.mxu2 %vm131_vm0, %v399_v34  ;;  %1097 = vmatmul.msk.bf16.vlgmr.msrb.gmra.mxu3 %vm131_vm0, %v399_v34 }
 0x3db   :  { %802 = vmatpush.bf16.msrb.mxu3 %v1459_v7  ;;  %789 = vmatpush.bf16.msrb.mxu2 %v1467_v27 }
 0x3df   :  { %803 = vmatpush.bf16.msrb.mxu3 %v1462_v11  ;;  %790 = vmatpush.bf16.msrb.mxu2 %v1470_v35 }
 0x3e3   :  { %804 = vmatpush.bf16.msrb.mxu3 %v1465_v25  ;;  %791 = vmatpush.bf16.msrb.mxu2 %v1476_v44 }
 0x3e7   :  { %805 = vmatpush.bf16.msrb.mxu3 %v1473_v39  ;;  %792 = vmatpush.bf16.msrb.mxu2 %v1483_v48 }
 0x45d   :  { %v420_v38 = vpop.f32.mrf.mxu2  ;;  %v433_v40 = vpop.f32.mrf.mxu3 }
 0x45e   :  { %v434_v41 = vadd.f32 %v433_v40, %v405_v37  ;;  %v421_v49 = vadd.f32 %v420_v38, %v404_v47 }
 0x460   :  { %1172 = vtanh.f32 %v434_v41  ;;  %v1098_v50 = vmul.f32 -1.442695, %v421_v49  ;;  %v1099_v5 = vmul.f32 -1.442695, %v434_v41 }
 0x462   :  { %1174 = vpow2.f32 %v1098_v50 }
 0x465   :  { %v422_v42 = vpop.f32.mrf.mxu2  ;;  %v435_v43 = vpop.f32.mrf.mxu3 }
 0x466   :  { %v1173_v45 = vpop.eup %1172 }
 0x467   :  { %478 = vrot.lane.b32.xlu0 %v1173_v45, %s1400_s1 }
 0x468   :  { %v1175_v51 = vpop.eup %1174 }
 0x469   :  { %v443_v52 = vadd.f32 1.0, %v1175_v51 }
 0x46b   :  { %1176 = vrcp.f32 %v443_v52  ;;  %v456_v58 = vand.u32 2147483648, %v443_v52  ;;  %vm450_vm4 = vweird.f32 %v443_v52  ;;  %v454_v59 = vand.u32 2147483647, %v443_v52 }
 0x46d   :  { %v457_v61 = vor.u32 1.1754944e-38, %v456_v58  ;;  %vm455_vm6 = vcmp.eq.f32.partialorder %v454_v59, 8.507059e+37 }
 0x471   :  { %v1177_v53 = vpop.eup %1176 }
 0x472   :  { %v446_v54 = vmul.f32 %v1177_v53, %v443_v52  ;;  %vm451_vm3 = vweird.f32 %v1177_v53 }
 0x473   :  { %vm452_vm5 = vmor %vm450_vm4, %vm451_vm3 }
 0x474   :  { %v447_v55 = vsub.f32 1.0, %v446_v54 }
 0x476   :  { %v448_v56 = vmul.f32 %v1177_v53, %v447_v55 }
 0x478   :  { %v449_v57 = vadd.f32 %v1177_v53, %v448_v56 }
 0x47a   :  { %v453_v60 = vsel %vm452_vm5, %v1177_v53, %v449_v57 }
 0x47b   :  { %v458_v63 = vsel %vm455_vm6, %v457_v61, %v453_v60 }
 0x47c   :  { %v476_v1 = vmul.f32 %v458_v63, %v1540_v15 }
 0x4d9   :  { %v479_v62 = vpop.permute.xlu0 %478 }
 0x4da   :  { %v481_v0 = vmul.f32 %v479_v62, %v458_v63 }
 0x4dc   :  { %483 = vrot.lane.b32.xlu1 %v481_v0, %s1400_s1 }
 0x54e   :  { %v484_v2 = vpop.permute.xlu1 %483 }
 0x54f   :  { %v1558_v3 = vadd.f32 %v484_v2, %v476_v1 }
 0x551   :  { %1178 = vtanh.f32 %v1558_v3 }
 0x552   :  { %1180 = vpow2.f32 %v1099_v5 }
 0x557   :  { %v1179_v4 = vpop.eup %1178 }
 0x558   :  { %489 = vrot.lane.b32.xlu2 %v1179_v4, %s1400_s1  ;;  %v1181_v6 = vpop.eup %1180  ;;  %v591_v4 = vld [vmem:[#allocation2 + $0x8] sm:$0x3] }
 0x559   :  { %v444_v8 = vadd.f32 1.0, %v1181_v6 }
 0x55b   :  { %1182 = vrcp.f32 %v444_v8  ;;  %v471_v15 = vand.u32 2147483648, %v444_v8  ;;  %vm465_vm8 = vweird.f32 %v444_v8  ;;  %v469_v16 = vand.u32 2147483647, %v444_v8 }
 0x55d   :  { %v472_v18 = vor.u32 1.1754944e-38, %v471_v15  ;;  %vm470_vm11 = vcmp.eq.f32.partialorder %v469_v16, 8.507059e+37 }
 0x561   :  { %v1183_v9 = vpop.eup %1182 }
 0x562   :  { %v461_v10 = vmul.f32 %v1183_v9, %v444_v8  ;;  %vm466_vm7 = vweird.f32 %v1183_v9 }
 0x563   :  { %vm467_vm10 = vmor %vm465_vm8, %vm466_vm7 }
 0x564   :  { %v462_v12 = vsub.f32 1.0, %v461_v10 }
 0x566   :  { %v463_v13 = vmul.f32 %v1183_v9, %v462_v12  ;;  %v590_v12 = vld [vmem:[#allocation2 + $0x18] sm:$0x3] }
 0x568   :  { %v464_v14 = vadd.f32 %v1183_v9, %v463_v13 }
 0x56a   :  { %v468_v17 = vsel %vm467_vm10, %v1183_v9, %v464_v14 }
 0x56b   :  { %v473_v19 = vsel %vm470_vm11, %v472_v18, %v468_v17 }
 0x5b2   :  { %v490_v20 = vpop.permute.xlu2 %489 }
 0x5b3   :  { %v492_v21 = vmul.f32 %v490_v20, %v473_v19 }
 0x5b5   :  { %493 = vst.msk [vmem:[#allocation9 + $0x4] sm:$0x3] %vm302_vm9, %v492_v21  ;;  %v494_v22 = vpack.c.bf16 %v492_v21, %v492_v21 }
 0x5b7   :  { %1100 = vmatmul.msk.bf16.vlgmr.msra.gmra.mxu0 %vm131_vm0, %v494_v22  ;;  %1101 = vmatmul.msk.bf16.vlgmr.msra.gmra.mxu1 %vm131_vm0, %v494_v22 }
 0x5b8   :  { %897 = vmatpush.bf16.msra.mxu1 %v1459_v7  ;;  %884 = vmatpush.bf16.msra.mxu0 %v1467_v27 }
 0x5bc   :  { %898 = vmatpush.bf16.msra.mxu1 %v1462_v11  ;;  %885 = vmatpush.bf16.msra.mxu0 %v1470_v35  ;;  %v495_v11 = vld [vmem:[#allocation2 + $0x10] sm:$0xc0] }
 0x5bd   :  { %v499_v35 = vrot.slane %v495_v11, 6 }
 0x5c0   :  { %899 = vmatpush.bf16.msra.mxu1 %v1465_v25  ;;  %886 = vmatpush.bf16.msra.mxu0 %v1476_v44 }
 0x5c4   :  { %900 = vmatpush.bf16.msra.mxu1 %v1473_v39  ;;  %887 = vmatpush.bf16.msra.mxu0 %v1483_v48 }
 0x634   :  { %v515_v26 = vpop.f32.mrf.mxu0  ;;  %v528_v28 = vpop.f32.mrf.mxu1 }
 0x635   :  { %v529_v29 = vadd.f32 %v528_v28, %v500_v24  ;;  %v516_v25 = vadd.f32 %v515_v26, %v499_v35 }
 0x637   :  { %1184 = vtanh.f32 %v529_v29  ;;  %v1102_v31 = vmul.f32 -1.442695, %v516_v25  ;;  %v1103_v51 = vmul.f32 -1.442695, %v529_v29 }
 0x639   :  { %1186 = vpow2.f32 %v1102_v31 }
 0x63c   :  { %v517_v7 = vpop.f32.mrf.mxu0  ;;  %v530_v27 = vpop.f32.mrf.mxu1 }
 0x63d   :  { %v1185_v30 = vpop.eup %1184 }
 0x63e   :  { %573 = vrot.lane.b32.xlu0 %v1185_v30, %s1400_s1 }
 0x63f   :  { %v1187_v44 = vpop.eup %1186 }
 0x640   :  { %v538_v39 = vadd.f32 1.0, %v1187_v44 }
 0x642   :  { %1188 = vrcp.f32 %v538_v39  ;;  %v551_v37 = vand.u32 2147483648, %v538_v39  ;;  %vm545_vm13 = vweird.f32 %v538_v39  ;;  %v549_v38 = vand.u32 2147483647, %v538_v39 }
 0x644   :  { %v552_v41 = vor.u32 1.1754944e-38, %v551_v37  ;;  %vm550_vm15 = vcmp.eq.f32.partialorder %v549_v38, 8.507059e+37 }
 0x648   :  { %v1189_v48 = vpop.eup %1188 }
 0x649   :  { %v541_v32 = vmul.f32 %v1189_v48, %v538_v39  ;;  %vm546_vm12 = vweird.f32 %v1189_v48 }
 0x64a   :  { %vm547_vm14 = vmor %vm545_vm13, %vm546_vm12 }
 0x64b   :  { %v542_v33 = vsub.f32 1.0, %v541_v32 }
 0x64d   :  { %v543_v34 = vmul.f32 %v1189_v48, %v542_v33 }
 0x64f   :  { %v544_v36 = vadd.f32 %v1189_v48, %v543_v34 }
 0x651   :  { %v548_v40 = vsel %vm547_vm14, %v1189_v48, %v544_v36 }
 0x652   :  { %v553_v43 = vsel %vm550_vm15, %v552_v41, %v548_v40 }
 0x653   :  { %v571_v46 = vmul.f32 %v553_v43, %v1558_v3 }
 0x6b0   :  { %v574_v42 = vpop.permute.xlu0 %573 }
 0x6b1   :  { %v576_v45 = vmul.f32 %v574_v42, %v553_v43 }
 0x6b3   :  { %578 = vrot.lane.b32.xlu1 %v576_v45, %s1400_s1 }
 0x725   :  { %v579_v47 = vpop.permute.xlu1 %578 }
 0x726   :  { %v581_v49 = vadd.f32 %v579_v47, %v571_v46  ;;  %v680_v46 = vld [vmem:[#allocation2 + $0x8] sm:$0xc] }
 0x727   :  { %v684_v47 = vrot.slane %v680_v46, 2 }
 0x728   :  { %1190 = vtanh.f32 %v581_v49 }
 0x729   :  { %1192 = vpow2.f32 %v1103_v51 }
 0x72e   :  { %v1191_v50 = vpop.eup %1190 }
 0x72f   :  { %584 = vrot.lane.b32.xlu2 %v1191_v50, %s1400_s1  ;;  %v1193_v52 = vpop.eup %1192 }
 0x730   :  { %v539_v53 = vadd.f32 1.0, %v1193_v52 }
 0x732   :  { %1194 = vrcp.f32 %v539_v53  ;;  %v566_v59 = vand.u32 2147483648, %v539_v53  ;;  %vm560_vm2 = vweird.f32 %v539_v53  ;;  %v564_v60 = vand.u32 2147483647, %v539_v53 }
 0x734   :  { %v567_v62 = vor.u32 1.1754944e-38, %v566_v59  ;;  %vm565_vm4 = vcmp.eq.f32.partialorder %v564_v60, 8.507059e+37 }
 0x738   :  { %v1195_v54 = vpop.eup %1194 }
 0x739   :  { %v556_v55 = vmul.f32 %v1195_v54, %v539_v53  ;;  %vm561_vm1 = vweird.f32 %v1195_v54 }
 0x73a   :  { %vm562_vm3 = vmor %vm560_vm2, %vm561_vm1 }
 0x73b   :  { %v557_v56 = vsub.f32 1.0, %v556_v55  ;;  %v679_v55 = vld [vmem:[#allocation2 + $0x18] sm:$0xc] }
 0x73d   :  { %v558_v57 = vmul.f32 %v1195_v54, %v557_v56  ;;  %v683_v56 = vrot.slane %v679_v55, 2 }
 0x73f   :  { %v559_v58 = vadd.f32 %v1195_v54, %v558_v57 }
 0x741   :  { %v563_v61 = vsel %vm562_vm3, %v1195_v54, %v559_v58 }
 0x742   :  { %v568_v63 = vsel %vm565_vm4, %v567_v62, %v563_v61 }
 0x789   :  { %v585_v0 = vpop.permute.xlu2 %584 }
 0x78a   :  { %v587_v1 = vmul.f32 %v585_v0, %v568_v63 }
 0x78c   :  { %588 = vst.msk [vmem:[#allocation9 + $0x6] sm:$0x3] %vm302_vm9, %v587_v1  ;;  %v589_v2 = vpack.c.bf16 %v587_v1, %v587_v1 }
 0x78e   :  { %1104 = vmatmul.msk.bf16.vlgmr.msra.gmra.mxu2 %vm131_vm0, %v589_v2  ;;  %1105 = vmatmul.msk.bf16.vlgmr.msra.gmra.mxu3 %vm131_vm0, %v589_v2 }
 0x811   :  { %v604_v3 = vpop.f32.mrf.mxu2  ;;  %v617_v5 = vpop.f32.mrf.mxu3 }
 0x812   :  { %v618_v6 = vadd.f32 %v617_v5, %v591_v4  ;;  %v605_v13 = vadd.f32 %v604_v3, %v590_v12 }
 0x814   :  { %1196 = vtanh.f32 %v618_v6  ;;  %v1106_v14 = vmul.f32 -1.442695, %v605_v13  ;;  %v1107_v25 = vmul.f32 -1.442695, %v618_v6 }
 0x816   :  { %1198 = vpow2.f32 %v1106_v14 }
 0x819   :  { %v606_v8 = vpop.f32.mrf.mxu2  ;;  %v619_v9 = vpop.f32.mrf.mxu3 }
 0x81a   :  { %v1197_v10 = vpop.eup %1196 }
 0x81b   :  { %662 = vrot.lane.b32.xlu0 %v1197_v10, %s1400_s1 }
 0x81c   :  { %v1199_v15 = vpop.eup %1198 }
 0x81d   :  { %v627_v16 = vadd.f32 1.0, %v1199_v15 }
 0x81f   :  { %1200 = vrcp.f32 %v627_v16  ;;  %v640_v22 = vand.u32 2147483648, %v627_v16  ;;  %vm634_vm6 = vweird.f32 %v627_v16  ;;  %v638_v23 = vand.u32 2147483647, %v627_v16 }
 0x821   :  { %v641_v26 = vor.u32 1.1754944e-38, %v640_v22  ;;  %vm639_vm8 = vcmp.eq.f32.partialorder %v638_v23, 8.507059e+37 }
 0x825   :  { %v1201_v17 = vpop.eup %1200 }
 0x826   :  { %v630_v18 = vmul.f32 %v1201_v17, %v627_v16  ;;  %vm635_vm5 = vweird.f32 %v1201_v17 }
 0x827   :  { %vm636_vm7 = vmor %vm634_vm6, %vm635_vm5 }
 0x828   :  { %v631_v19 = vsub.f32 1.0, %v630_v18 }
 0x82a   :  { %v632_v20 = vmul.f32 %v1201_v17, %v631_v19 }
 0x82c   :  { %v633_v21 = vadd.f32 %v1201_v17, %v632_v20 }
 0x82e   :  { %v637_v24 = vsel %vm636_vm7, %v1201_v17, %v633_v21 }
 0x82f   :  { %v642_v29 = vsel %vm639_vm8, %v641_v26, %v637_v24 }
 0x830   :  { %v660_v27 = vmul.f32 %v642_v29, %v581_v49 }
 0x88d   :  { %v663_v28 = vpop.permute.xlu0 %662 }
 0x88e   :  { %v665_v7 = vmul.f32 %v663_v28, %v642_v29 }
 0x890   :  { %667 = vrot.lane.b32.xlu1 %v665_v7, %s1400_s1 }
 0x902   :  { %v668_v30 = vpop.permute.xlu1 %667 }
 0x903   :  { %v1582_v11 = vadd.f32 %v668_v30, %v660_v27 }
 0x905   :  { %1202 = vtanh.f32 %v1582_v11 }
 0x906   :  { %1204 = vpow2.f32 %v1107_v25 }
 0x90b   :  { %v1203_v35 = vpop.eup %1202 }
 0x90c   :  { %673 = vrot.lane.b32.xlu2 %v1203_v35, %s1400_s1  ;;  %v1205_v31 = vpop.eup %1204 }
 0x90d   :  { %v628_v44 = vadd.f32 1.0, %v1205_v31 }
 0x90f   :  { %1206 = vrcp.f32 %v628_v44  ;;  %v655_v36 = vand.u32 2147483648, %v628_v44  ;;  %vm649_vm11 = vweird.f32 %v628_v44  ;;  %v653_v37 = vand.u32 2147483647, %v628_v44 }
 0x911   :  { %v656_v40 = vor.u32 1.1754944e-38, %v655_v36  ;;  %vm654_vm13 = vcmp.eq.f32.partialorder %v653_v37, 8.507059e+37 }
 0x915   :  { %v1207_v39 = vpop.eup %1206 }
 0x916   :  { %v645_v48 = vmul.f32 %v1207_v39, %v628_v44  ;;  %vm650_vm10 = vweird.f32 %v1207_v39 }
 0x917   :  { %vm651_vm12 = vmor %vm649_vm11, %vm650_vm10 }
 0x918   :  { %v646_v32 = vsub.f32 1.0, %v645_v48 }
 0x91a   :  { %v647_v33 = vmul.f32 %v1207_v39, %v646_v32 }
 0x91c   :  { %v648_v34 = vadd.f32 %v1207_v39, %v647_v33  ;;  %v774_v33 = vld [vmem:[#allocation2 + $0x18] sm:$0x30] }
 0x91e   :  { %v652_v38 = vsel %vm651_vm12, %v1207_v39, %v648_v34  ;;  %v778_v34 = vrot.slane %v774_v33, 4 }
 0x91f   :  { %v657_v41 = vsel %vm654_vm13, %v656_v40, %v652_v38 }
 0x966   :  { %v674_v42 = vpop.permute.xlu2 %673 }
 0x967   :  { %v676_v43 = vmul.f32 %v674_v42, %v657_v41 }
 0x969   :  { %677 = vst.msk [vmem:[#allocation9 + $0x8] sm:$0x3] %vm302_vm9, %v676_v43  ;;  %v678_v45 = vpack.c.bf16 %v676_v43, %v676_v43 }
 0x96b   :  { %1108 = vmatmul.msk.bf16.vlgmr.msrb.gmra.mxu0 %vm131_vm0, %v678_v45  ;;  %1109 = vmatmul.msk.bf16.vlgmr.msrb.gmra.mxu1 %vm131_vm0, %v678_v45 }
 0x9e8   :  { %v699_v49 = vpop.f32.mrf.mxu0  ;;  %v712_v50 = vpop.f32.mrf.mxu1 }
 0x9e9   :  { %v713_v51 = vadd.f32 %v712_v50, %v684_v47  ;;  %v700_v57 = vadd.f32 %v699_v49, %v683_v56 }
 0x9eb   :  { %1208 = vtanh.f32 %v713_v51  ;;  %v1110_v58 = vmul.f32 -1.442695, %v700_v57  ;;  %v1111_v15 = vmul.f32 -1.442695, %v713_v51 }
 0x9ed   :  { %1210 = vpow2.f32 %v1110_v58 }
 0x9f0   :  { %v701_v52 = vpop.f32.mrf.mxu0  ;;  %v714_v53 = vpop.f32.mrf.mxu1 }
 0x9f1   :  { %v1209_v54 = vpop.eup %1208 }
 0x9f2   :  { %757 = vrot.lane.b32.xlu0 %v1209_v54, %s1400_s1 }
 0x9f3   :  { %v1211_v59 = vpop.eup %1210 }
 0x9f4   :  { %v722_v60 = vadd.f32 1.0, %v1211_v59 }
 0x9f6   :  { %1212 = vrcp.f32 %v722_v60  ;;  %v735_v2 = vand.u32 2147483648, %v722_v60  ;;  %vm729_vm15 = vweird.f32 %v722_v60  ;;  %v733_v3 = vand.u32 2147483647, %v722_v60 }
 0x9f8   :  { %v736_v5 = vor.u32 1.1754944e-38, %v735_v2  ;;  %vm734_vm2 = vcmp.eq.f32.partialorder %v733_v3, 8.507059e+37 }
 0x9fc   :  { %v1213_v61 = vpop.eup %1212 }
 0x9fd   :  { %v725_v62 = vmul.f32 %v1213_v61, %v722_v60  ;;  %vm730_vm14 = vweird.f32 %v1213_v61 }
 0x9fe   :  { %vm731_vm1 = vmor %vm729_vm15, %vm730_vm14 }
 0x9ff   :  { %v726_v63 = vsub.f32 1.0, %v725_v62 }
 0xa01   :  { %v727_v0 = vmul.f32 %v1213_v61, %v726_v63 }
 0xa03   :  { %v728_v1 = vadd.f32 %v1213_v61, %v727_v0 }
 0xa05   :  { %v732_v4 = vsel %vm731_vm1, %v1213_v61, %v728_v1 }
 0xa06   :  { %v737_v8 = vsel %vm734_vm2, %v736_v5, %v732_v4 }
 0xa07   :  { %v755_v10 = vmul.f32 %v737_v8, %v1582_v11  ;;  %v775_v11 = vld [vmem:[#allocation2 + $0x8] sm:$0x30] }
 0xa08   :  { %v779_v35 = vrot.slane %v775_v11, 4 }
 0xa64   :  { %v758_v6 = vpop.permute.xlu0 %757 }
 0xa65   :  { %v760_v9 = vmul.f32 %v758_v6, %v737_v8 }
 0xa67   :  { %762 = vrot.lane.b32.xlu1 %v760_v9, %s1400_s1 }
 0xad9   :  { %v763_v12 = vpop.permute.xlu1 %762 }
 0xada   :  { %v1592_v13 = vadd.f32 %v763_v12, %v755_v10 }
 0xadc   :  { %1214 = vtanh.f32 %v1592_v13 }
 0xadd   :  { %1216 = vpow2.f32 %v1111_v15 }
 0xae2   :  { %v1215_v14 = vpop.eup %1214 }
 0xae3   :  { %768 = vrot.lane.b32.xlu2 %v1215_v14, %s1400_s1  ;;  %v1217_v16 = vpop.eup %1216 }
 0xae4   :  { %v723_v17 = vadd.f32 1.0, %v1217_v16 }
 0xae6   :  { %1218 = vrcp.f32 %v723_v17  ;;  %v750_v23 = vand.u32 2147483648, %v723_v17  ;;  %vm744_vm4 = vweird.f32 %v723_v17  ;;  %v748_v24 = vand.u32 2147483647, %v723_v17 }
 0xae8   :  { %v751_v28 = vor.u32 1.1754944e-38, %v750_v23  ;;  %vm749_vm6 = vcmp.eq.f32.partialorder %v748_v24, 8.507059e+37 }
 0xaec   :  { %v1219_v18 = vpop.eup %1218 }
 0xaed   :  { %v740_v19 = vmul.f32 %v1219_v18, %v723_v17  ;;  %vm745_vm3 = vweird.f32 %v1219_v18 }
 0xaee   :  { %vm746_vm5 = vmor %vm744_vm4, %vm745_vm3 }
 0xaef   :  { %v741_v20 = vsub.f32 1.0, %v740_v19 }
 0xaf1   :  { %v742_v21 = vmul.f32 %v1219_v18, %v741_v20 }
 0xaf3   :  { %v743_v22 = vadd.f32 %v1219_v18, %v742_v21  ;;  %v869_v21 = vld [vmem:[#allocation2 + $0x18] sm:$0xc0] }
 0xaf5   :  { %v747_v26 = vsel %vm746_vm5, %v1219_v18, %v743_v22  ;;  %v873_v22 = vrot.slane %v869_v21, 6 }
 0xaf6   :  { %v752_v29 = vsel %vm749_vm6, %v751_v28, %v747_v26 }
 0xb3d   :  { %v769_v7 = vpop.permute.xlu2 %768 }
 0xb3e   :  { %v771_v27 = vmul.f32 %v769_v7, %v752_v29 }
 0xb40   :  { %772 = vst.msk [vmem:[#allocation9 + $0xa] sm:$0x3] %vm302_vm9, %v771_v27  ;;  %v773_v30 = vpack.c.bf16 %v771_v27, %v771_v27 }
 0xb42   :  { %1112 = vmatmul.msk.bf16.vlgmr.msrb.gmra.mxu2 %vm131_vm0, %v773_v30  ;;  %1113 = vmatmul.msk.bf16.vlgmr.msrb.gmra.mxu3 %vm131_vm0, %v773_v30 }
 0xbc5   :  { %v794_v25 = vpop.f32.mrf.mxu2  ;;  %v807_v31 = vpop.f32.mrf.mxu3 }
 0xbc6   :  { %v808_v44 = vadd.f32 %v807_v31, %v779_v35  ;;  %v795_v36 = vadd.f32 %v794_v25, %v778_v34 }
 0xbc8   :  { %1220 = vtanh.f32 %v808_v44  ;;  %v1114_v37 = vmul.f32 -1.442695, %v795_v36  ;;  %v1115_v59 = vmul.f32 -1.442695, %v808_v44 }
 0xbca   :  { %1222 = vpow2.f32 %v1114_v37 }
 0xbcd   :  { %v796_v39 = vpop.f32.mrf.mxu2  ;;  %v809_v48 = vpop.f32.mrf.mxu3 }
 0xbce   :  { %v1221_v32 = vpop.eup %1220 }
 0xbcf   :  { %852 = vrot.lane.b32.xlu0 %v1221_v32, %s1400_s1 }
 0xbd0   :  { %v1223_v38 = vpop.eup %1222 }
 0xbd1   :  { %v817_v40 = vadd.f32 1.0, %v1223_v38 }
 0xbd3   :  { %1224 = vrcp.f32 %v817_v40  ;;  %v830_v47 = vand.u32 2147483648, %v817_v40  ;;  %vm824_vm8 = vweird.f32 %v817_v40  ;;  %v828_v49 = vand.u32 2147483647, %v817_v40 }
 0xbd5   :  { %v831_v51 = vor.u32 1.1754944e-38, %v830_v47  ;;  %vm829_vm11 = vcmp.eq.f32.partialorder %v828_v49, 8.507059e+37 }
 0xbd9   :  { %v1225_v41 = vpop.eup %1224 }
 0xbda   :  { %v820_v42 = vmul.f32 %v1225_v41, %v817_v40  ;;  %vm825_vm7 = vweird.f32 %v1225_v41 }
 0xbdb   :  { %vm826_vm10 = vmor %vm824_vm8, %vm825_vm7 }
 0xbdc   :  { %v821_v43 = vsub.f32 1.0, %v820_v42 }
 0xbde   :  { %v822_v45 = vmul.f32 %v1225_v41, %v821_v43 }
 0xbe0   :  { %v823_v46 = vadd.f32 %v1225_v41, %v822_v45 }
 0xbe2   :  { %v827_v50 = vsel %vm826_vm10, %v1225_v41, %v823_v46 }
 0xbe3   :  { %v832_v53 = vsel %vm829_vm11, %v831_v51, %v827_v50 }
 0xbe4   :  { %v850_v55 = vmul.f32 %v832_v53, %v1592_v13  ;;  %v870_v13 = vld [vmem:[#allocation2 + $0x8] sm:$0xc0] }
 0xbe5   :  { %v874_v14 = vrot.slane %v870_v13, 6 }
 0xc41   :  { %v853_v52 = vpop.permute.xlu0 %852 }
 0xc42   :  { %v855_v54 = vmul.f32 %v853_v52, %v832_v53 }
 0xc44   :  { %857 = vrot.lane.b32.xlu1 %v855_v54, %s1400_s1 }
 0xcb6   :  { %v858_v56 = vpop.permute.xlu1 %857 }
 0xcb7   :  { %v1602_v57 = vadd.f32 %v858_v56, %v850_v55 }
 0xcb9   :  { %1226 = vtanh.f32 %v1602_v57 }
 0xcba   :  { %1228 = vpow2.f32 %v1115_v59 }
 0xcbf   :  { %v1227_v58 = vpop.eup %1226 }
 0xcc0   :  { %863 = vrot.lane.b32.xlu2 %v1227_v58, %s1400_s1  ;;  %v1229_v60 = vpop.eup %1228 }
 0xcc1   :  { %v818_v61 = vadd.f32 1.0, %v1229_v60 }
 0xcc3   :  { %1230 = vrcp.f32 %v818_v61  ;;  %v845_v3 = vand.u32 2147483648, %v818_v61  ;;  %vm839_vm13 = vweird.f32 %v818_v61  ;;  %v843_v4 = vand.u32 2147483647, %v818_v61 }
 0xcc5   :  { %v846_v6 = vor.u32 1.1754944e-38, %v845_v3  ;;  %vm844_vm15 = vcmp.eq.f32.partialorder %v843_v4, 8.507059e+37 }
 0xcc9   :  { %v1231_v62 = vpop.eup %1230 }
 0xcca   :  { %v835_v63 = vmul.f32 %v1231_v62, %v818_v61  ;;  %vm840_vm12 = vweird.f32 %v1231_v62 }
 0xccb   :  { %vm841_vm14 = vmor %vm839_vm13, %vm840_vm12 }
 0xccc   :  { %v836_v0 = vsub.f32 1.0, %v835_v63 }
 0xcce   :  { %v837_v1 = vmul.f32 %v1231_v62, %v836_v0 }
 0xcd0   :  { %v838_v2 = vadd.f32 %v1231_v62, %v837_v1 }
 0xcd2   :  { %v842_v5 = vsel %vm841_vm14, %v1231_v62, %v838_v2 }
 0xcd3   :  { %v847_v8 = vsel %vm844_vm15, %v846_v6, %v842_v5 }
 0xd1a   :  { %v864_v9 = vpop.permute.xlu2 %863 }
 0xd1b   :  { %v866_v10 = vmul.f32 %v864_v9, %v847_v8 }
 0xd1d   :  { %867 = vst.msk [vmem:[#allocation9 + $0xc] sm:$0x3] %vm302_vm9, %v866_v10  ;;  %v868_v12 = vpack.c.bf16 %v866_v10, %v866_v10 }
 0xd1f   :  { %1116 = vmatmul.msk.bf16.vlgmr.msra.gmra.mxu0 %vm131_vm0, %v868_v12  ;;  %1117 = vmatmul.msk.bf16.vlgmr.msra.gmra.mxu1 %vm131_vm0, %v868_v12 }
 0xd9c   :  { %v889_v15 = vpop.f32.mrf.mxu0  ;;  %v902_v16 = vpop.f32.mrf.mxu1 }
 0xd9d   :  { %v903_v17 = vadd.f32 %v902_v16, %v874_v14  ;;  %v890_v23 = vadd.f32 %v889_v15, %v873_v22 }
 0xd9f   :  { %1232 = vtanh.f32 %v903_v17  ;;  %v1118_v24 = vmul.f32 -1.442695, %v890_v23  ;;  %v1119_v38 = vmul.f32 -1.442695, %v903_v17 }
 0xda1   :  { %1234 = vpow2.f32 %v1118_v24 }
 0xda4   :  { %v891_v18 = vpop.f32.mrf.mxu0  ;;  %v904_v19 = vpop.f32.mrf.mxu1 }
 0xda5   :  { %v1233_v20 = vpop.eup %1232 }
 0xda6   :  { %947 = vrot.lane.b32.xlu0 %v1233_v20, %s1400_s1 }
 0xda7   :  { %v1235_v26 = vpop.eup %1234 }
 0xda8   :  { %v912_v28 = vadd.f32 1.0, %v1235_v26 }
 0xdaa   :  { %1236 = vrcp.f32 %v912_v28  ;;  %v925_v35 = vand.u32 2147483648, %v912_v28  ;;  %vm919_vm1 = vweird.f32 %v912_v28  ;;  %v923_v25 = vand.u32 2147483647, %v912_v28 }
 0xdac   :  { %v926_v44 = vor.u32 1.1754944e-38, %v925_v35  ;;  %vm924_vm3 = vcmp.eq.f32.partialorder %v923_v25, 8.507059e+37 }
 0xdb0   :  { %v1237_v29 = vpop.eup %1236 }
 0xdb1   :  { %v915_v7 = vmul.f32 %v1237_v29, %v912_v28  ;;  %vm920_vm0 = vweird.f32 %v1237_v29 }
 0xdb2   :  { %vm921_vm2 = vmor %vm919_vm1, %vm920_vm0 }
 0xdb3   :  { %v916_v27 = vsub.f32 1.0, %v915_v7 }
 0xdb5   :  { %v917_v30 = vmul.f32 %v1237_v29, %v916_v27 }
 0xdb7   :  { %v918_v11 = vadd.f32 %v1237_v29, %v917_v30 }
 0xdb9   :  { %v922_v31 = vsel %vm921_vm2, %v1237_v29, %v918_v11 }
 0xdba   :  { %v927_v48 = vsel %vm924_vm3, %v926_v44, %v922_v31 }
 0xdbb   :  { %v945_v33 = vmul.f32 %v927_v48, %v1602_v57 }
 0xe18   :  { %v948_v39 = vpop.permute.xlu0 %947 }
 0xe19   :  { %v950_v32 = vmul.f32 %v948_v39, %v927_v48 }
 0xe1b   :  { %952 = vrot.lane.b32.xlu1 %v950_v32, %s1400_s1 }
 0xe8d   :  { %v953_v34 = vpop.permute.xlu1 %952 }
 0xe8e   :  { %v955_v36 = vadd.f32 %v953_v34, %v945_v33 }
 0xe90   :  { %1238 = vtanh.f32 %v955_v36  ;;  %965 = vrot.lane.b32.xlu0 %v955_v36, %s1400_s1 }
 0xe91   :  { %1240 = vpow2.f32 %v1119_v38 }
 0xe96   :  { %v1239_v37 = vpop.eup %1238 }
 0xe97   :  { %958 = vrot.lane.b32.xlu2 %v1239_v37, %s1400_s1  ;;  %v1241_v40 = vpop.eup %1240 }
 0xe98   :  { %v913_v41 = vadd.f32 1.0, %v1241_v40 }
 0xe9a   :  { %1242 = vrcp.f32 %v913_v41  ;;  %v940_v49 = vand.u32 2147483648, %v913_v41  ;;  %vm934_vm5 = vweird.f32 %v913_v41  ;;  %v938_v50 = vand.u32 2147483647, %v913_v41 }
 0xe9c   :  { %v941_v52 = vor.u32 1.1754944e-38, %v940_v49  ;;  %vm939_vm7 = vcmp.eq.f32.partialorder %v938_v50, 8.507059e+37 }
 0xea0   :  { %v1243_v42 = vpop.eup %1242 }
 0xea1   :  { %v930_v43 = vmul.f32 %v1243_v42, %v913_v41  ;;  %vm935_vm4 = vweird.f32 %v1243_v42 }
 0xea2   :  { %vm936_vm6 = vmor %vm934_vm5, %vm935_vm4 }
 0xea3   :  { %v931_v45 = vsub.f32 1.0, %v930_v43 }
 0xea5   :  { %v932_v46 = vmul.f32 %v1243_v42, %v931_v45 }
 0xea7   :  { %v933_v47 = vadd.f32 %v1243_v42, %v932_v46 }
 0xea9   :  { %v937_v51 = vsel %vm936_vm6, %v1243_v42, %v933_v47 }
 0xeaa   :  { %v942_v53 = vsel %vm939_vm7, %v941_v52, %v937_v51 }
 0xef1   :  { %v959_v54 = vpop.permute.xlu2 %958 }
 0xef2   :  { %v961_v55 = vmul.f32 %v959_v54, %v942_v53 }
 0xef4   :  { %962 = vst.msk [vmem:[#allocation9 + $0xe] sm:$0x3] %vm302_vm9, %v961_v55 }
 0xef5   :  { %963 = vst.msk [vmem:[#allocation10] sm:$0x3] %vm302_vm9, %v961_v55  ;;  %981 = dma.vmem_to_hbm [thread:$0]  %s974_s15, 256, %s976_s18, [#allocation5], %s1397_s29, %s1397_s29, %s1398_s30  }
 0xef6   :  { %992 = dma.vmem_to_hbm [thread:$0]  %s988_s20, 32, %s990_s23, [#allocation11]  }
 0xf02   :  { %v966_v56 = vpop.permute.xlu0 %965 }
 0xf03   :  { %968 = vst.msk [vmem:[#allocation12] sm:$0x3] %vm302_vm9, %v966_v56 }
 0xf04   :  { %1003 = dma.vmem_to_hbm [thread:$0]  %s999_s24, 32, %s1001_s26, [#allocation11]  }
 0xf05   :  { %1392 = dma.done.wait [#allocation5], 256  }
 0xf06   :  { %1393 = vsyncadd [#allocation5], 4294967040 }
 0xf07   :  { %1394 = dma.done.wait [#allocation11], 64  }
 0xf08   :  { %1395 = vsyncadd [#allocation11], 4294967232 }
 0xf09   :  { %1016 = vsyncpa [#allocation4], 1 }
 0xf0a   :  { %1017 = vsyncpa [#allocation7], 1 }
 0xf0b   :  { %1018 = vsyncpa [#allocation5], 1 }
 0xf0c   :  { %1019 = vsyncpa [#allocation11], 1 }

</bundles_post_ra>
